<compile_context>
chip_gen: v6e
topology: v6e:2x2x1
jax: 0.10.0
libtpu: 0.0.40
codegen_flags: <defaults>
</compile_context>

<pallas_src>
import jax
import jax.numpy as jnp
from jax.experimental import pallas as pl
from jax.experimental.pallas import tpu as pltpu

# ----------------------------- Constants (small, synthetic) -----------------
TAGS_NUM = 16            # number of knowledge concepts (know_length)
TAG_EMB_DIM = 16         # knowledge embedding size
TEXT_FEATURE_DIM = 32    # text feature size (embedder output dim)
HIDDEN_DIM = 32          # seq hidden size (per knowledge concept)
DIFFICULTY_EMB_DIM = 8   # difficulty embedding size
DIFFS_NUM = 8            # number of difficulty buckets
DIFFS_MIN = 0.0
DIFFS_MAX = 10.0

VD = TEXT_FEATURE_DIM + DIFFICULTY_EMB_DIM   # 40 : cat(text, diff) width
XD = 2 * VD                                  # 80 : GRU input width (correct/wrong halves)
G3 = 3 * HIDDEN_DIM                          # 96 : fused gate width [r | z | n]

STUDENT_BLOCK = 8                            # students per grid step (8*16 = 128 sublanes)


# ----------------------------- Pallas kernel --------------------------------
def _ektm_d_kernel(
    kv_ref,     # (T, BS, E)    knowledge vectors, time-major
    x_ref,      # (T, BS, XD)   GRU input cat(v*pos, v*(1-pos)), time-major
    v_ref,      # (T, BS, VD)   cat(text, diff), time-major
    h0_ref,     # (BS*K, H)     initial hidden, rows ordered (student, concept)
    kmT_ref,    # (E, K)        knowledge memory, transposed
    rep_ref,    # (BS*K, BS)    0/1 replicate-each-student-row-K-times matrix
    seg_ref,    # (BS, BS*K)    0/1 per-student segment-sum matrix (= rep^T)
    sel_ref,    # (BS*K, K)     0/1 "pick concept k in row b*K+k" matrix
    wi_ref,     # (XD, G3)      GRU input weight  [r|z|n]  (bf16)
    bi_ref,     # (1, G3)
    wh_ref,     # (H, G3)       GRU hidden weight [r|z|n]  (bf16)
    bh_ref,     # (1, G3)
    wsv_ref,    # (1, VD)       score weight, v part
    wsh_ref,    # (1, H)        score weight, attended-hidden part
    bsc_ref,    # (1, 1)        score bias
    score_ref,  # OUT (T, BS, 1)
    h_out_ref,  # OUT (BS*K, H)
    alpha_sc,   # scratch (T, BS, K)  f32
    gi_sc,      # scratch (T, BS, G3) f32
):
    T, BS, E = kv_ref.shape
    BSK, H = h0_ref.shape
    K = kmT_ref.shape[1]
    N = T * BS

    # ---- hoisted h-independent precompute, batched over all T*BS rows ------
    # attention logits + softmax over the K knowledge concepts
    kv2 = kv_ref[...].reshape(N, E)                                     # (N, E)
    logits = jnp.dot(kv2, kmT_ref[...], preferred_element_type=jnp.float32)   # (N, K)
    m = jnp.max(logits, axis=-1, keepdims=True)
    e = jnp.exp(logits - m)
    den = jnp.sum(e, axis=-1, keepdims=True)
    alpha_sc[...] = (e * pl.reciprocal(den, approx=True)).reshape(T, BS, K)

    # GRU input projection for every step at once (bf16 MXU, f32 accumulate)
    x2 = x_ref[...].reshape(N, XD).astype(jnp.bfloat16)
    gi_sc[...] = jnp.dot(x2, wi_ref[...],
                         preferred_element_type=jnp.float32).reshape(T, BS, G3)

    # ---- recurrent loop over time: only h-dependent work remains -----------
    def step(t, h2):                                   # h2: (BS*K, H) f32
        # alpha as a per-(student, concept)-row column, no relayout:
        # rep @ alpha_t replicates each student's alpha row K times, sel picks k.
        arep = jnp.dot(rep_ref[...], alpha_sc[t],
                       preferred_element_type=jnp.float32)              # (BSK, K)
        a_col = jnp.sum(arep * sel_ref[...], axis=-1, keepdims=True)    # (BSK, 1)

        # prediction from the PRE-update hidden:
        #   s = sigmoid( v . ws_v + (alpha^T h) . ws_h + b )
        rs = jnp.sum(h2 * a_col * wsh_ref[...], axis=-1, keepdims=True)  # (BSK, 1)
        sh = jnp.dot(seg_ref[...], rs,
                     preferred_element_type=jnp.float32)                 # (BS, 1)
        sv = jnp.sum(v_ref[t] * wsv_ref[...], axis=-1, keepdims=True)    # (BS, 1)
        score_ref[t] = jax.nn.sigmoid(sv + sh + bsc_ref[...])

        # GRU cell over all (student, concept) rows; input gated by alpha.
        # (alpha x) @ W_i == alpha * (x @ W_i); bias b_i is NOT alpha-scaled.
        gvec = jnp.dot(rep_ref[...], gi_sc[t],
                       preferred_element_type=jnp.float32)               # (BSK, G3)
        gi = a_col * gvec + bi_ref[...]                                   # (BSK, G3)
        gh = jnp.dot(h2.astype(jnp.bfloat16), wh_ref[...],
                     preferred_element_type=jnp.float32) + bh_ref[...]    # (BSK, G3)

        r_gate = jax.nn.sigmoid(gi[:, 0:H] + gh[:, 0:H])
        z_gate = jax.nn.sigmoid(gi[:, H:2 * H] + gh[:, H:2 * H])
        n_gate = jnp.tanh(gi[:, 2 * H:] + r_gate * gh[:, 2 * H:])
        return (1.0 - z_gate) * n_gate + z_gate * h2

    h_final = jax.lax.fori_loop(0, T, step, h0_ref[...])
    h_out_ref[...] = h_final


def ektm_d_seq_model(params, kv_seq, v_seq, res_seq, h0):
    """EKTM_D_SeqModel over a batch of sequences: one pallas_call, grid=(B/BS,)."""
    B, T, E = kv_seq.shape
    K, H = TAGS_NUM, HIDDEN_DIM
    BS = STUDENT_BLOCK
    G = -(-B // BS)                 # ceil-div student groups
    Bp = G * BS
    pad = Bp - B

    def pad_b(a):
        if pad == 0:
            return a
        return jnp.pad(a, ((0, pad),) + ((0, 0),) * (a.ndim - 1))

    kv_p = pad_b(kv_seq)
    v_p = pad_b(v_seq)
    res_p = pad_b(res_seq)
    h0_p = pad_b(h0)

    # GRU input built in the glue -> no per-step lane concat inside the kernel.
    pos = res_p.astype(jnp.float32)[..., None]                       # (Bp, T, 1)
    x_p = jnp.concatenate([v_p * pos, v_p * (1.0 - pos)], axis=-1)   # (Bp, T, XD)

    # Time-major layouts so the kernel indexes the leading dim per step.
    kv_tm = jnp.transpose(kv_p, (1, 0, 2))       # (T, Bp, E)
    x_tm = jnp.transpose(x_p, (1, 0, 2))         # (T, Bp, XD)
    v_tm = jnp.transpose(v_p, (1, 0, 2))         # (T, Bp, VD)
    h0_flat = h0_p.reshape(Bp * K, H)            # (Bp*K, H)

    # Weights / constants (resident in VMEM, DMA'd once thanks to const index_map).
    kmT = params["knowledge_memory"].T                           # (E, K)
    w_score = params["w_score"]                                  # (VD+H, 1)
    wsv = w_score[:VD, 0][None, :]                               # (1, VD)
    wsh = w_score[VD:, 0][None, :]                               # (1, H)
    bsc = params["b_score"]                                      # (1, 1)
    wi = params["w_i"].astype(jnp.bfloat16)                      # (XD, G3)
    wh = params["w_h"].astype(jnp.bfloat16)                      # (H, G3)
    bi, bh = params["b_i"], params["b_h"]

    eye_b = jnp.eye(BS, dtype=jnp.float32)
    rep = jnp.repeat(eye_b, K, axis=0)                           # (BS*K, BS)
    seg = rep.T                                                  # (BS, BS*K)
    sel = jnp.tile(jnp.eye(K, dtype=jnp.float32), (BS, 1))       # (BS*K, K)

    const2 = lambda g: (0, 0)          # weights: same block every grid step
    perb3 = lambda g: (0, g, 0)        # per-student-group blocks (time-major)

    grid_spec = pltpu.PrefetchScalarGridSpec(
        num_scalar_prefetch=0,
        grid=(G,),
        in_specs=[
            pl.BlockSpec((T, BS, E), perb3),            # kv_tm
            pl.BlockSpec((T, BS, XD), perb3),           # x_tm
            pl.BlockSpec((T, BS, VD), perb3),           # v_tm
            pl.BlockSpec((BS * K, H), lambda g: (g, 0)),  # h0_flat
            pl.BlockSpec((E, K), const2),               # kmT
            pl.BlockSpec((BS * K, BS), const2),         # rep
            pl.BlockSpec((BS, BS * K), const2),         # seg
            pl.BlockSpec((BS * K, K), const2),          # sel
            pl.BlockSpec((XD, G3), const2),             # w_i (bf16)
            pl.BlockSpec((1, G3), const2),              # b_i
            pl.BlockSpec((H, G3), const2),              # w_h (bf16)
            pl.BlockSpec((1, G3), const2),              # b_h
            pl.BlockSpec((1, VD), const2),              # ws_v
            pl.BlockSpec((1, H), const2),               # ws_h
            pl.BlockSpec((1, 1), const2),               # b_score
        ],
        out_specs=(
            pl.BlockSpec((T, BS, 1), perb3),            # scores
            pl.BlockSpec((BS * K, H), lambda g: (g, 0)),  # hidden
        ),
        scratch_shapes=[
            pltpu.VMEM((T, BS, K), jnp.float32),        # hoisted alpha
            pltpu.VMEM((T, BS, G3), jnp.float32),       # hoisted X @ W_i
        ],
    )

    s_tm, h_flat = pl.pallas_call(
        _ektm_d_kernel,
        out_shape=(
            jax.ShapeDtypeStruct((T, Bp, 1), jnp.float32),
            jax.ShapeDtypeStruct((Bp * K, H), jnp.float32),
        ),
        grid_spec=grid_spec,
        compiler_params=pltpu.CompilerParams(
            dimension_semantics=("parallel",)),
    )(kv_tm, x_tm, v_tm, h0_flat, kmT, rep, seg, sel,
      wi, bi, wh, bh, wsv, wsh, bsc)

    scores = jnp.transpose(s_tm[:, :B, 0])               # (B, T)
    h_new = h_flat.reshape(Bp, K, H)[:B]                  # (B, K, H)
    return scores, h_new


# ----------------------------- Module glue (plain JAX, jitted with kernel) --
def init_params(key):
    ks = jax.random.split(key, 10)
    u = lambda k, shape, s=0.1: jax.random.uniform(k, shape, jnp.float32, -s, s)
    return {
        "tag_emb": u(ks[0], (TAGS_NUM, TAG_EMB_DIM), 1.0),            # KnowledgeModel
        "diff_emb": u(ks[1], (DIFFS_NUM, DIFFICULTY_EMB_DIM), 1.0),   # DifficultyEncoder
        "knowledge_memory": u(ks[2], (TAGS_NUM, TAG_EMB_DIM), 1.0),   # seq model memory
        "h_initial": u(ks[3], (TAGS_NUM, HIDDEN_DIM), 1.0),           # default hidden
        # fused score head: Linear(VD + H -> 1); rows [0:VD] text/diff, [VD:] attended h
        "w_score": u(ks[4], (VD + HIDDEN_DIM, 1)),
        "b_score": u(ks[5], (1, 1)),
        # fused GRUCell(XD -> H): columns laid out as [w_r | w_z | w_n]
        "w_i": u(ks[6], (XD, G3)),
        "b_i": u(ks[7], (1, G3)),
        "w_h": u(ks[8], (HIDDEN_DIM, G3)),
        "b_h": u(ks[9], (1, G3)),
    }


def _encode_difficulty(params, difficulty):
    bucket = jnp.clip(
        jnp.round((difficulty - DIFFS_MIN) / (DIFFS_MAX - DIFFS_MIN) * (DIFFS_NUM - 1)),
        0, DIFFS_NUM - 1,
    ).astype(jnp.int32)
    return params["diff_emb"][bucket]


def _knowledge_vector(params, tags):
    denom = jnp.maximum(jnp.sum(tags, axis=-1, keepdims=True), 1.0)
    return (tags @ params["tag_emb"]) / denom


@jax.jit
def ektm_d_sequence_forward(params, content, tags, difficulty, result, hidden):
    """Batched-sequence forward: content (B,T,Tx), tags (B,T,K), difficulty (B,T),
    result (B,T), hidden (B,K,H) -> scores (B,T), hidden (B,K,H)."""
    diff_v = _encode_difficulty(params, difficulty)                       # (B,T,D)
    kv = _knowledge_vector(params, tags)                                  # (B,T,E)
    v = jnp.concatenate([content.astype(jnp.float32), diff_v], axis=-1)   # (B,T,VD)
    res = (result >= 0.5).astype(jnp.float32)                             # (B,T)
    return ektm_d_seq_model(params, kv, v, res, hidden)


def ektm_d_forward(params, item, result, hidden=None, get_status=False):
    """Mirrors EKTM_D.forward(item, result, hidden, get_status) -> (s, h)."""
    # TODO(synk): BERT/OpenAI text embedder has no Pallas equivalent; item["content"]
    # is the precomputed text feature vector. get_status diagnostics beyond h not modelled.
    h = params["h_initial"] if hidden is None else hidden                 # (K, H)
    s, h_new = ektm_d_sequence_forward(
        params,
        jnp.asarray(item["content"], jnp.float32)[None, None, :],
        jnp.asarray(item["tags"], jnp.float32)[None, None, :],
        jnp.asarray(item["difficulty"], jnp.float32)[None, None],
        jnp.asarray(result, jnp.float32)[None, None],
        h[None],
    )
    return s[0, 0], h_new[0]


# ----------------------------- Demo ------------------------------------------
if __name__ == "__main__":
    key = jax.random.PRNGKey(0)
    pkey, ckey, tkey, dkey, rkey = jax.random.split(key, 5)
    params = init_params(pkey)

    # Batched sequences: 16 students x 16 exercises -> grid of 2 student groups
    # (even, >= 2, so the "parallel" axis can split across v7x's two TensorCores).
    B, T = 16, 16
    content = jax.random.normal(ckey, (B, T, TEXT_FEATURE_DIM), jnp.float32)
    tags = (jax.random.uniform(tkey, (B, T, TAGS_NUM)) < 0.25).astype(jnp.float32)
    difficulty = jax.random.uniform(dkey, (B, T), jnp.float32, DIFFS_MIN, DIFFS_MAX)
    result = (jax.random.uniform(rkey, (B, T)) < 0.5).astype(jnp.float32)
    h0 = jnp.broadcast_to(params["h_initial"], (B, TAGS_NUM, HIDDEN_DIM))

    s_seq, h_seq = ektm_d_sequence_forward(params, content, tags, difficulty, result, h0)
    jax.block_until_ready((s_seq, h_seq))
    assert s_seq.shape == (B, T) and h_seq.shape == (B, TAGS_NUM, HIDDEN_DIM)
    assert bool(jnp.all(jnp.isfinite(s_seq))) and bool(jnp.all(jnp.isfinite(h_seq)))
    assert bool(jnp.all((s_seq > 0.0) & (s_seq < 1.0)))

    # Single-step API mirroring EKTM_D.forward, chaining hidden (Markov property).
    item = {
        "content": content[0, 0],
        "tags": tags[0, 0].at[2].set(1.0),
        "difficulty": difficulty[0, 0],
    }
    s1, h1 = ektm_d_forward(params, item, jnp.float32(1.0), hidden=None)
    s2, h2 = ektm_d_forward(params, item, jnp.float32(0.0), hidden=h1)
    jax.block_until_ready((s2, h2))
    assert s1.shape == () and h2.shape == (TAGS_NUM, HIDDEN_DIM)
    assert bool(jnp.isfinite(s1)) and bool(jnp.isfinite(s2))
    assert bool(jnp.all(jnp.isfinite(h2)))

    print("KERNEL_OK")
</pallas_src>

<mosaic_0001>
module attributes {stable_mosaic.version = 11 : i64} {
  func.func @_ektm_d_kernel(%arg0: i32, %arg1: memref<16x8x16xf32, #tpu.memory_space<vmem>>, %arg2: memref<16x8x80xf32, #tpu.memory_space<vmem>>, %arg3: memref<16x8x40xf32, #tpu.memory_space<vmem>>, %arg4: memref<128x32xf32, #tpu.memory_space<vmem>>, %arg5: memref<16x16xf32, #tpu.memory_space<vmem>>, %arg6: memref<128x8xf32, #tpu.memory_space<vmem>>, %arg7: memref<8x128xf32, #tpu.memory_space<vmem>>, %arg8: memref<128x16xf32, #tpu.memory_space<vmem>>, %arg9: memref<80x96xbf16, #tpu.memory_space<vmem>>, %arg10: memref<1x96xf32, #tpu.memory_space<vmem>>, %arg11: memref<32x96xbf16, #tpu.memory_space<vmem>>, %arg12: memref<1x96xf32, #tpu.memory_space<vmem>>, %arg13: memref<1x40xf32, #tpu.memory_space<vmem>>, %arg14: memref<1x32xf32, #tpu.memory_space<vmem>>, %arg15: memref<1x1xf32, #tpu.memory_space<vmem>>, %arg16: memref<16x8x1xf32, #tpu.memory_space<vmem>>, %arg17: memref<128x32xf32, #tpu.memory_space<vmem>>, %arg18: memref<16x8x16xf32, #tpu.memory_space<vmem>>, %arg19: memref<16x8x96xf32, #tpu.memory_space<vmem>>) attributes {dimension_semantics = [#tpu.dimension_semantics<parallel>], iteration_bounds = array<i64: 2>, scalar_prefetch = 0 : i64, scratch_operands = 2 : i64, tpu.core_type = #tpu.core_type<tc>, window_params = [{transform_indices = @transform_0, window_bounds = array<i64: 16, 8, 16>}, {transform_indices = @transform_1, window_bounds = array<i64: 16, 8, 80>}, {transform_indices = @transform_2, window_bounds = array<i64: 16, 8, 40>}, {transform_indices = @transform_3, window_bounds = array<i64: 128, 32>}, {pipeline_mode = #tpu.pipeline_mode<synchronous>, transform_indices = @transform_4, window_bounds = array<i64: 16, 16>}, {pipeline_mode = #tpu.pipeline_mode<synchronous>, transform_indices = @transform_5, window_bounds = array<i64: 128, 8>}, {pipeline_mode = #tpu.pipeline_mode<synchronous>, transform_indices = @transform_6, window_bounds = array<i64: 8, 128>}, {pipeline_mode = #tpu.pipeline_mode<synchronous>, transform_indices = @transform_7, window_bounds = array<i64: 128, 16>}, {pipeline_mode = #tpu.pipeline_mode<synchronous>, transform_indices = @transform_8, window_bounds = array<i64: 80, 96>}, {pipeline_mode = #tpu.pipeline_mode<synchronous>, transform_indices = @transform_9, window_bounds = array<i64: 1, 96>}, {pipeline_mode = #tpu.pipeline_mode<synchronous>, transform_indices = @transform_10, window_bounds = array<i64: 32, 96>}, {pipeline_mode = #tpu.pipeline_mode<synchronous>, transform_indices = @transform_11, window_bounds = array<i64: 1, 96>}, {pipeline_mode = #tpu.pipeline_mode<synchronous>, transform_indices = @transform_12, window_bounds = array<i64: 1, 40>}, {pipeline_mode = #tpu.pipeline_mode<synchronous>, transform_indices = @transform_13, window_bounds = array<i64: 1, 32>}, {pipeline_mode = #tpu.pipeline_mode<synchronous>, transform_indices = @transform_14, window_bounds = array<i64: 1, 1>}, {transform_indices = @transform_15, window_bounds = array<i64: 16, 8, 1>}, {transform_indices = @transform_16, window_bounds = array<i64: 128, 32>}]} {
    %c0 = arith.constant 0 : index
    %c0_0 = arith.constant 0 : index
    %c0_1 = arith.constant 0 : index
    %0 = vector.load %arg1[%c0, %c0_0, %c0_1] : memref<16x8x16xf32, #tpu.memory_space<vmem>>, vector<16x8x16xf32>
    %1 = vector.shape_cast %0 : vector<16x8x16xf32> to vector<128x16xf32>
    %c0_2 = arith.constant 0 : index
    %c0_3 = arith.constant 0 : index
    %2 = vector.load %arg5[%c0_2, %c0_3] : memref<16x16xf32, #tpu.memory_space<vmem>>, vector<16x16xf32>
    %cst = arith.constant dense<0.000000e+00> : vector<128x16xf32>
    %3 = tpu.matmul %1, %2, %cst {dimension_numbers = #tpu.dot_dimension_numbers<[1], [0], [0], [1], [0, 0, 1, 1], [], []>} : vector<128x16xf32>, vector<16x16xf32>, vector<128x16xf32> -> vector<128x16xf32>
    %cst_4 = arith.constant dense<0xFF800000> : vector<128xf32>
    %4 = vector.multi_reduction <maximumf>, %3, %cst_4 [1] : vector<128x16xf32> to vector<128xf32>
    %5 = vector.shape_cast %4 : vector<128xf32> to vector<128x1xf32>
    %6 = vector.broadcast %5 : vector<128x1xf32> to vector<128x16xf32>
    %7 = arith.subf %3, %6 : vector<128x16xf32>
    %8 = math.exp %7 : vector<128x16xf32>
    %cst_5 = arith.constant dense<0.000000e+00> : vector<128xf32>
    %9 = vector.multi_reduction <add>, %8, %cst_5 [1] : vector<128x16xf32> to vector<128xf32>
    %10 = vector.shape_cast %9 : vector<128xf32> to vector<128x1xf32>
    %11 = tpu.reciprocal %10 {approx = true} : vector<128x1xf32> -> vector<128x1xf32>
    %12 = vector.broadcast %11 : vector<128x1xf32> to vector<128x16xf32>
    %13 = arith.mulf %8, %12 : vector<128x16xf32>
    %14 = vector.shape_cast %13 : vector<128x16xf32> to vector<16x8x16xf32>
    %c0_6 = arith.constant 0 : index
    %c0_7 = arith.constant 0 : index
    %c0_8 = arith.constant 0 : index
    %15 = vector.load %arg18[%c0_6, %c0_7, %c0_8] : memref<16x8x16xf32, #tpu.memory_space<vmem>>, vector<16x8x16xf32>
    tpu.vector_store %arg18[%c0_6, %c0_7, %c0_8], %14 {strides = array<i32>} : memref<16x8x16xf32, #tpu.memory_space<vmem>>, vector<16x8x16xf32>,
    %c0_9 = arith.constant 0 : index
    %c0_10 = arith.constant 0 : index
    %c0_11 = arith.constant 0 : index
    %16 = vector.load %arg2[%c0_9, %c0_10, %c0_11] : memref<16x8x80xf32, #tpu.memory_space<vmem>>, vector<16x8x80xf32>
    %17 = vector.shape_cast %16 : vector<16x8x80xf32> to vector<128x80xf32>
    %18 = arith.truncf %17 : vector<128x80xf32> to vector<128x80xbf16>
    %c0_12 = arith.constant 0 : index
    %c0_13 = arith.constant 0 : index
    %19 = vector.load %arg9[%c0_12, %c0_13] : memref<80x96xbf16, #tpu.memory_space<vmem>>, vector<80x96xbf16>
    %cst_14 = arith.constant dense<0.000000e+00> : vector<128x96xf32>
    %20 = tpu.matmul %18, %19, %cst_14 {dimension_numbers = #tpu.dot_dimension_numbers<[1], [0], [0], [1], [0, 0, 1, 1], [], []>} : vector<128x80xbf16>, vector<80x96xbf16>, vector<128x96xf32> -> vector<128x96xf32>
    %21 = vector.shape_cast %20 : vector<128x96xf32> to vector<16x8x96xf32>
    %c0_15 = arith.constant 0 : index
    %c0_16 = arith.constant 0 : index
    %c0_17 = arith.constant 0 : index
    %22 = vector.load %arg19[%c0_15, %c0_16, %c0_17] : memref<16x8x96xf32, #tpu.memory_space<vmem>>, vector<16x8x96xf32>
    tpu.vector_store %arg19[%c0_15, %c0_16, %c0_17], %21 {strides = array<i32>} : memref<16x8x96xf32, #tpu.memory_space<vmem>>, vector<16x8x96xf32>,
    %c0_18 = arith.constant 0 : index
    %c0_19 = arith.constant 0 : index
    %23 = vector.load %arg4[%c0_18, %c0_19] : memref<128x32xf32, #tpu.memory_space<vmem>>, vector<128x32xf32>
    %c0_i32 = arith.constant 0 : i32
    %c16_i32 = arith.constant 16 : i32
    %24 = arith.addi %c0_i32, %c16_i32 : i32
    %c1_i32 = arith.constant 1 : i32
    %25 = scf.for %arg20 = %c0_i32 to %24 step %c1_i32 iter_args(%arg21 = %23) -> (vector<128x32xf32>)  : i32 {
      %c0_23 = arith.constant 0 : index
      %c0_24 = arith.constant 0 : index
      %27 = vector.load %arg6[%c0_23, %c0_24] : memref<128x8xf32, #tpu.memory_space<vmem>>, vector<128x8xf32>
      %28 = arith.index_cast %arg20 : i32 to index
      %c0_25 = arith.constant 0 : index
      %c0_26 = arith.constant 0 : index
      %29 = vector.load %arg18[%28, %c0_25, %c0_26] : memref<16x8x16xf32, #tpu.memory_space<vmem>>, vector<1x8x16xf32>
      %30 = vector.shape_cast %29 : vector<1x8x16xf32> to vector<8x16xf32>
      %cst_27 = arith.constant dense<0.000000e+00> : vector<128x16xf32>
      %31 = tpu.matmul %27, %30, %cst_27 {dimension_numbers = #tpu.dot_dimension_numbers<[1], [0], [0], [1], [0, 0, 1, 1], [], []>} : vector<128x8xf32>, vector<8x16xf32>, vector<128x16xf32> -> vector<128x16xf32>
      %c0_28 = arith.constant 0 : index
      %c0_29 = arith.constant 0 : index
      %32 = vector.load %arg8[%c0_28, %c0_29] : memref<128x16xf32, #tpu.memory_space<vmem>>, vector<128x16xf32>
      %33 = arith.mulf %31, %32 : vector<128x16xf32>
      %cst_30 = arith.constant dense<0.000000e+00> : vector<128xf32>
      %34 = vector.multi_reduction <add>, %33, %cst_30 [1] : vector<128x16xf32> to vector<128xf32>
      %35 = vector.shape_cast %34 : vector<128xf32> to vector<128x1xf32>
      %36 = vector.broadcast %35 : vector<128x1xf32> to vector<128x32xf32>
      %37 = arith.mulf %arg21, %36 : vector<128x32xf32>
      %c0_31 = arith.constant 0 : index
      %c0_32 = arith.constant 0 : index
      %38 = vector.load %arg14[%c0_31, %c0_32] : memref<1x32xf32, #tpu.memory_space<vmem>>, vector<1x32xf32>
      %39 = vector.broadcast %38 : vector<1x32xf32> to vector<128x32xf32>
      %40 = arith.mulf %37, %39 : vector<128x32xf32>
      %cst_33 = arith.constant dense<0.000000e+00> : vector<128xf32>
      %41 = vector.multi_reduction <add>, %40, %cst_33 [1] : vector<128x32xf32> to vector<128xf32>
      %42 = vector.shape_cast %41 : vector<128xf32> to vector<128x1xf32>
      %c0_34 = arith.constant 0 : index
      %c0_35 = arith.constant 0 : index
      %43 = vector.load %arg7[%c0_34, %c0_35] : memref<8x128xf32, #tpu.memory_space<vmem>>, vector<8x128xf32>
      %cst_36 = arith.constant dense<0.000000e+00> : vector<8x1xf32>
      %44 = tpu.matmul %43, %42, %cst_36 {dimension_numbers = #tpu.dot_dimension_numbers<[1], [0], [0], [1], [0, 0, 1, 1], [], []>} : vector<8x128xf32>, vector<128x1xf32>, vector<8x1xf32> -> vector<8x1xf32>
      %45 = arith.index_cast %arg20 : i32 to index
      %c0_37 = arith.constant 0 : index
      %c0_38 = arith.constant 0 : index
      %46 = vector.load %arg3[%45, %c0_37, %c0_38] : memref<16x8x40xf32, #tpu.memory_space<vmem>>, vector<1x8x40xf32>
      %47 = vector.shape_cast %46 : vector<1x8x40xf32> to vector<8x40xf32>
      %c0_39 = arith.constant 0 : index
      %c0_40 = arith.constant 0 : index
      %48 = vector.load %arg13[%c0_39, %c0_40] : memref<1x40xf32, #tpu.memory_space<vmem>>, vector<1x40xf32>
      %49 = vector.broadcast %48 : vector<1x40xf32> to vector<8x40xf32>
      %50 = arith.mulf %47, %49 : vector<8x40xf32>
      %cst_41 = arith.constant dense<0.000000e+00> : vector<8xf32>
      %51 = vector.multi_reduction <add>, %50, %cst_41 [1] : vector<8x40xf32> to vector<8xf32>
      %52 = vector.shape_cast %51 : vector<8xf32> to vector<8x1xf32>
      %53 = arith.addf %52, %44 : vector<8x1xf32>
      %c0_42 = arith.constant 0 : index
      %c0_43 = arith.constant 0 : index
      %54 = vector.load %arg15[%c0_42, %c0_43] : memref<1x1xf32, #tpu.memory_space<vmem>>, vector<1x1xf32>
      %55 = vector.broadcast %54 : vector<1x1xf32> to vector<8x1xf32>
      %56 = arith.addf %53, %55 : vector<8x1xf32>
      %57 = arith.negf %56 : vector<8x1xf32>
      %58 = math.exp %57 : vector<8x1xf32>
      %cst_44 = arith.constant 1.000000e+00 : f32
      %59 = vector.broadcast %cst_44 : f32 to vector<8x1xf32>
      %60 = arith.addf %59, %58 : vector<8x1xf32>
      %61 = arith.divf %59, %60 : vector<8x1xf32>
      %62 = arith.index_cast %arg20 : i32 to index
      %c0_45 = arith.constant 0 : index
      %c0_46 = arith.constant 0 : index
      %63 = vector.load %arg16[%62, %c0_45, %c0_46] : memref<16x8x1xf32, #tpu.memory_space<vmem>>, vector<1x8x1xf32>
      %64 = vector.shape_cast %63 : vector<1x8x1xf32> to vector<8x1xf32>
      %65 = vector.shape_cast %61 : vector<8x1xf32> to vector<1x8x1xf32>
      tpu.vector_store %arg16[%62, %c0_45, %c0_46], %65 {strides = array<i32>} : memref<16x8x1xf32, #tpu.memory_space<vmem>>, vector<1x8x1xf32>,
      %c0_47 = arith.constant 0 : index
      %c0_48 = arith.constant 0 : index
      %66 = vector.load %arg6[%c0_47, %c0_48] : memref<128x8xf32, #tpu.memory_space<vmem>>, vector<128x8xf32>
      %67 = arith.index_cast %arg20 : i32 to index
      %c0_49 = arith.constant 0 : index
      %c0_50 = arith.constant 0 : index
      %68 = vector.load %arg19[%67, %c0_49, %c0_50] : memref<16x8x96xf32, #tpu.memory_space<vmem>>, vector<1x8x96xf32>
      %69 = vector.shape_cast %68 : vector<1x8x96xf32> to vector<8x96xf32>
      %cst_51 = arith.constant dense<0.000000e+00> : vector<128x96xf32>
      %70 = tpu.matmul %66, %69, %cst_51 {dimension_numbers = #tpu.dot_dimension_numbers<[1], [0], [0], [1], [0, 0, 1, 1], [], []>} : vector<128x8xf32>, vector<8x96xf32>, vector<128x96xf32> -> vector<128x96xf32>
      %71 = vector.broadcast %35 : vector<128x1xf32> to vector<128x96xf32>
      %72 = arith.mulf %71, %70 : vector<128x96xf32>
      %c0_52 = arith.constant 0 : index
      %c0_53 = arith.constant 0 : index
      %73 = vector.load %arg10[%c0_52, %c0_53] : memref<1x96xf32, #tpu.memory_space<vmem>>, vector<1x96xf32>
      %74 = vector.broadcast %73 : vector<1x96xf32> to vector<128x96xf32>
      %75 = arith.addf %72, %74 : vector<128x96xf32>
      %76 = arith.truncf %arg21 : vector<128x32xf32> to vector<128x32xbf16>
      %c0_54 = arith.constant 0 : index
      %c0_55 = arith.constant 0 : index
      %77 = vector.load %arg11[%c0_54, %c0_55] : memref<32x96xbf16, #tpu.memory_space<vmem>>, vector<32x96xbf16>
      %cst_56 = arith.constant dense<0.000000e+00> : vector<128x96xf32>
      %78 = tpu.matmul %76, %77, %cst_56 {dimension_numbers = #tpu.dot_dimension_numbers<[1], [0], [0], [1], [0, 0, 1, 1], [], []>} : vector<128x32xbf16>, vector<32x96xbf16>, vector<128x96xf32> -> vector<128x96xf32>
      %c0_57 = arith.constant 0 : index
      %c0_58 = arith.constant 0 : index
      %79 = vector.load %arg12[%c0_57, %c0_58] : memref<1x96xf32, #tpu.memory_space<vmem>>, vector<1x96xf32>
      %80 = vector.broadcast %79 : vector<1x96xf32> to vector<128x96xf32>
      %81 = arith.addf %78, %80 : vector<128x96xf32>
      %82 = vector.extract_strided_slice %75 {offsets = [0, 0], sizes = [128, 32], strides = [1, 1]} : vector<128x96xf32> to vector<128x32xf32>
      %83 = vector.extract_strided_slice %81 {offsets = [0, 0], sizes = [128, 32], strides = [1, 1]} : vector<128x96xf32> to vector<128x32xf32>
      %84 = arith.addf %82, %83 : vector<128x32xf32>
      %85 = arith.negf %84 : vector<128x32xf32>
      %86 = math.exp %85 : vector<128x32xf32>
      %cst_59 = arith.constant 1.000000e+00 : f32
      %87 = vector.broadcast %cst_59 : f32 to vector<128x32xf32>
      %88 = arith.addf %87, %86 : vector<128x32xf32>
      %89 = arith.divf %87, %88 : vector<128x32xf32>
      %90 = vector.extract_strided_slice %75 {offsets = [0, 32], sizes = [128, 32], strides = [1, 1]} : vector<128x96xf32> to vector<128x32xf32>
      %91 = vector.extract_strided_slice %81 {offsets = [0, 32], sizes = [128, 32], strides = [1, 1]} : vector<128x96xf32> to vector<128x32xf32>
      %92 = arith.addf %90, %91 : vector<128x32xf32>
      %93 = arith.negf %92 : vector<128x32xf32>
      %94 = math.exp %93 : vector<128x32xf32>
      %cst_60 = arith.constant 1.000000e+00 : f32
      %95 = vector.broadcast %cst_60 : f32 to vector<128x32xf32>
      %96 = arith.addf %95, %94 : vector<128x32xf32>
      %97 = arith.divf %95, %96 : vector<128x32xf32>
      %98 = vector.extract_strided_slice %75 {offsets = [0, 64], sizes = [128, 32], strides = [1, 1]} : vector<128x96xf32> to vector<128x32xf32>
      %99 = vector.extract_strided_slice %81 {offsets = [0, 64], sizes = [128, 32], strides = [1, 1]} : vector<128x96xf32> to vector<128x32xf32>
      %100 = arith.mulf %89, %99 : vector<128x32xf32>
      %101 = arith.addf %98, %100 : vector<128x32xf32>
      %102 = math.tanh %101 : vector<128x32xf32>
      %cst_61 = arith.constant 1.000000e+00 : f32
      %103 = vector.broadcast %cst_61 : f32 to vector<128x32xf32>
      %104 = arith.subf %103, %97 : vector<128x32xf32>
      %105 = arith.mulf %104, %102 : vector<128x32xf32>
      %106 = arith.mulf %97, %arg21 : vector<128x32xf32>
      %107 = arith.addf %105, %106 : vector<128x32xf32>
      scf.yield %107 : vector<128x32xf32>
    }
    %c16_i32_20 = arith.constant 16 : i32
    %c0_21 = arith.constant 0 : index
    %c0_22 = arith.constant 0 : index
    %26 = vector.load %arg17[%c0_21, %c0_22] : memref<128x32xf32, #tpu.memory_space<vmem>>, vector<128x32xf32>
    tpu.vector_store %arg17[%c0_21, %c0_22], %25 {strides = array<i32>} : memref<128x32xf32, #tpu.memory_space<vmem>>, vector<128x32xf32>,
    return
  }
  func.func @transform_0(%arg0: i32) -> (i32, i32, i32) {
    %c0_i32 = arith.constant 0 : i32
    %c0_i32_0 = arith.constant 0 : i32
    %c0_i32_1 = arith.constant 0 : i32
    return %c0_i32, %arg0, %c0_i32_0 : i32, i32, i32
  }
  func.func @transform_1(%arg0: i32) -> (i32, i32, i32) {
    %c0_i32 = arith.constant 0 : i32
    %c0_i32_0 = arith.constant 0 : i32
    %c0_i32_1 = arith.constant 0 : i32
    return %c0_i32, %arg0, %c0_i32_0 : i32, i32, i32
  }
  func.func @transform_2(%arg0: i32) -> (i32, i32, i32) {
    %c0_i32 = arith.constant 0 : i32
    %c0_i32_0 = arith.constant 0 : i32
    %c0_i32_1 = arith.constant 0 : i32
    return %c0_i32, %arg0, %c0_i32_0 : i32, i32, i32
  }
  func.func @transform_3(%arg0: i32) -> (i32, i32) {
    %c0_i32 = arith.constant 0 : i32
    %c0_i32_0 = arith.constant 0 : i32
    return %arg0, %c0_i32 : i32, i32
  }
  func.func @transform_4(%arg0: i32) -> (i32, i32) {
    %c0_i32 = arith.constant 0 : i32
    %c0_i32_0 = arith.constant 0 : i32
    %c0_i32_1 = arith.constant 0 : i32
    return %c0_i32, %c0_i32_0 : i32, i32
  }
  func.func @transform_5(%arg0: i32) -> (i32, i32) {
    %c0_i32 = arith.constant 0 : i32
    %c0_i32_0 = arith.constant 0 : i32
    %c0_i32_1 = arith.constant 0 : i32
    return %c0_i32, %c0_i32_0 : i32, i32
  }
  func.func @transform_6(%arg0: i32) -> (i32, i32) {
    %c0_i32 = arith.constant 0 : i32
    %c0_i32_0 = arith.constant 0 : i32
    %c0_i32_1 = arith.constant 0 : i32
    return %c0_i32, %c0_i32_0 : i32, i32
  }
  func.func @transform_7(%arg0: i32) -> (i32, i32) {
    %c0_i32 = arith.constant 0 : i32
    %c0_i32_0 = arith.constant 0 : i32
    %c0_i32_1 = arith.constant 0 : i32
    return %c0_i32, %c0_i32_0 : i32, i32
  }
  func.func @transform_8(%arg0: i32) -> (i32, i32) {
    %c0_i32 = arith.constant 0 : i32
    %c0_i32_0 = arith.constant 0 : i32
    %c0_i32_1 = arith.constant 0 : i32
    return %c0_i32, %c0_i32_0 : i32, i32
  }
  func.func @transform_9(%arg0: i32) -> (i32, i32) {
    %c0_i32 = arith.constant 0 : i32
    %c0_i32_0 = arith.constant 0 : i32
    %c0_i32_1 = arith.constant 0 : i32
    return %c0_i32, %c0_i32_0 : i32, i32
  }
  func.func @transform_10(%arg0: i32) -> (i32, i32) {
    %c0_i32 = arith.constant 0 : i32
    %c0_i32_0 = arith.constant 0 : i32
    %c0_i32_1 = arith.constant 0 : i32
    return %c0_i32, %c0_i32_0 : i32, i32
  }
  func.func @transform_11(%arg0: i32) -> (i32, i32) {
    %c0_i32 = arith.constant 0 : i32
    %c0_i32_0 = arith.constant 0 : i32
    %c0_i32_1 = arith.constant 0 : i32
    return %c0_i32, %c0_i32_0 : i32, i32
  }
  func.func @transform_12(%arg0: i32) -> (i32, i32) {
    %c0_i32 = arith.constant 0 : i32
    %c0_i32_0 = arith.constant 0 : i32
    %c0_i32_1 = arith.constant 0 : i32
    return %c0_i32, %c0_i32_0 : i32, i32
  }
  func.func @transform_13(%arg0: i32) -> (i32, i32) {
    %c0_i32 = arith.constant 0 : i32
    %c0_i32_0 = arith.constant 0 : i32
    %c0_i32_1 = arith.constant 0 : i32
    return %c0_i32, %c0_i32_0 : i32, i32
  }
  func.func @transform_14(%arg0: i32) -> (i32, i32) {
    %c0_i32 = arith.constant 0 : i32
    %c0_i32_0 = arith.constant 0 : i32
    %c0_i32_1 = arith.constant 0 : i32
    return %c0_i32, %c0_i32_0 : i32, i32
  }
  func.func @transform_15(%arg0: i32) -> (i32, i32, i32) {
    %c0_i32 = arith.constant 0 : i32
    %c0_i32_0 = arith.constant 0 : i32
    %c0_i32_1 = arith.constant 0 : i32
    return %c0_i32, %arg0, %c0_i32_0 : i32, i32, i32
  }
  func.func @transform_16(%arg0: i32) -> (i32, i32) {
    %c0_i32 = arith.constant 0 : i32
    %c0_i32_0 = arith.constant 0 : i32
    return %arg0, %c0_i32 : i32, i32
  }
}

</mosaic_0001>

<bundles_post_ra>
// kernel: ektm_d_sequence_forward.1
= control target key start
LH: loop header
LB: loop body
LE: loop exit
PB: predicated region body
PF: predicated region fallthrough
CT: control target
= control target key end

     0   :  { %s5746_s0 = inlined_call_operand.vmem [shape: f32[16,16,16], index: 0, kind: input, shape index: {}]   ;;  %s5747_s1 = inlined_call_operand.vmem [shape: f32[16,16,80], index: 1, kind: input, shape index: {}]   ;;  %s5748_s2 = inlined_call_operand.vmem [shape: f32[16,16,40], index: 2, kind: input, shape index: {}]   ;;  %s5749_s3 = inlined_call_operand.vmem [shape: f32[256,32], index: 3, kind: input, shape index: {}]   ;;  %s5750_s4 = inlined_call_operand.vmem [shape: f32[16,16], index: 4, kind: input, shape index: {}]   ;;  %s5751_s5 = inlined_call_operand.vmem [shape: f32[128,8], index: 5, kind: input, shape index: {}]   ;;  %s5752_s6 = inlined_call_operand.vmem [shape: f32[8,128], index: 6, kind: input, shape index: {}]   ;;  %s5753_s7 = inlined_call_operand.vmem [shape: f32[128,16], index: 7, kind: input, shape index: {}]   ;;  %s5754_s8 = inlined_call_operand.vmem [shape: bf16[80,96], index: 8, kind: input, shape index: {}]   ;;  %s5755_s9 = inlined_call_operand.vmem [shape: f32[1,96], index: 9, kind: input, shape index: {}]   ;;  %s5756_s10 = inlined_call_operand.vmem [shape: bf16[32,96], index: 10, kind: input, shape index: {}]   ;;  %s5757_s11 = inlined_call_operand.vmem [shape: f32[1,96], index: 11, kind: input, shape index: {}]   ;;  %s5758_s12 = inlined_call_operand.vmem [shape: f32[1,40], index: 12, kind: input, shape index: {}]   ;;  %s5759_s13 = inlined_call_operand.vmem [shape: f32[1,32], index: 13, kind: input, shape index: {}]   ;;  %s5760_s14 = inlined_call_operand.<no memory space> [shape: f32[1,1], index: 14, kind: input, shape index: {}]   ;;  %s5761_s15 = inlined_call_operand.vmem [shape: f32[16,16,1], index: 15, kind: output, shape index: {0}]   ;;  %s5762_s16 = inlined_call_operand.hbm [shape: f32[256,32], index: 16, kind: output, shape index: {1}]  }
   0x1   :  { %5778 = sst [smem:[#allocation24_spill]] %s5746_s0  ;;  %v22_v0 = vstv %s5760_s14 }
   0x2   :  { %5779 = sst [smem:[#allocation25_spill]] %s5747_s1  ;;  %23 = vst [vmem:[#allocation4] sm:$0x1] %v22_v0 }
   0x3   :  { %5780 = sst [smem:[#allocation26_spill]] %s5748_s2 }
   0x4   :  { %5781 = sst [smem:[#allocation27_spill]] %s5749_s3 }
   0x5   :  { %5782 = sst [smem:[#allocation28_spill]] %s5750_s4 }
   0x6   :  { %24 = vsyncpa [#allocation10], 0 }
   0x7   :  { %26 = vsyncpa [#allocation10 + $0x1], 0  ;;  %s4322_s23 = smov 0   ;;  %s4324_s24 = smov 0  }
   0x8   :  { %s4326_s25 = smov 0   ;;  %s4328_s26 = smov 0  }
   0x9 LB: > { %s4343_s14 = sadd.s32 4294967295, %s4156_s26   ;;  %s3291_s27 = sadd.s32 4294967294, %s4156_s26   ;;  %s4156_s26 = sphi %s4328_s26, %s5833_s26   ;;  %s4152_s25 = sphi %s4326_s25, %s5837_s25   ;;  %s4148_s24 = sphi %s4324_s24, %s5836_s24   ;;  %s4144_s23 = sphi %s4322_s23, %s5835_s23  }
   0xa   : > { %s4347_s28 = sadd.s32 1, %s4156_s26   ;;  %s39_s29 = sadd.s32 1, %s4152_s25 }
   0xb   : > { %5783 = sst [smem:[#allocation12_spill]] %s4347_s28  ;;  %s36_s30 = ssub.s32 %s4156_s26, %s4347_s28 }
   0xc   : > { %p46_p0 = scmp.ne.s32.totalorder %s4152_s25, %s4148_s24  ;;  %p37_p1 = scmp.eq.s32.totalorder %s36_s30, 0 }
   0xd   : > { %p47_p2 = scmp.eq.s32.totalorder %s4156_s26, 0  ;;  %p385_p3 = scmp.eq.s32.totalorder %s4343_s14, 1 }
   0xe   : > { %p416_p4 = scmp.ne.s32.totalorder %s4148_s24, %s4144_s23  ;;  %p417_p7 = scmp.eq.s32.totalorder %s3291_s27, 1 }
   0xf   : > { %s4359_s0 = scalar_select %p37_p1, %s4152_s25, %s39_s29  }
  0x10   : > { %p4361_p5 = por %p47_p2, %p46_p0  ;;  %p4365_p6 = por %p385_p3, %p46_p0 }
  0x11   : > { %5784 = sst [smem:[#allocation13_spill]] %s4359_s0  ;;  %p4369_p8 = por %p417_p7, %p416_p4 }
  0x12   : > { %p3293_p9 = scmp.ge.s32.totalorder %s4156_s26, 2 }
  0x14   : > { %466 = sbr.rel (%p3293_p9) target bundleno = 79 (0x4f), region = 60 }
  0x19   : > { %469 = sbr.rel (!%p4361_p5) target bundleno = 43 (0x2b), region = 64  ;;  %s471_s20 = sand.u32 (%p4361_p5), 1, %s4152_s25  }
  0x1a   : > { %s3295_s21 = sshll.u32 (%p4361_p5), %s4156_s26, 3  ;;  %s3294_s22 = sshll.u32 (%p4361_p5), %s471_s20, 7 }
  0x1b   : > { %s5788_s27 = sld [smem:[#allocation24_spill]] (%p4361_p5)  ;;  %s473_s28 = scalar_lea.vmem (%p4361_p5), [#allocation5], %s3294_s22 }
  0x21   : > { %s4383_s0 = scalar_lea.vmem %s5788_s27, %s3295_s21 }
  0x22   : > { %v534_v1 = vld [vmem:[%s4383_s0] sm:$0xff]  ;;  %v536_v2 = vld [vmem:[%s4383_s0 + $0x10] sm:$0xff] }
  0x23   : > { %v538_v3 = vld [vmem:[%s4383_s0 + $0x20] sm:$0xff]  ;;  %535 = vst [vmem:[%s473_s28] sm:$0xff] %v534_v1  ;;  %537 = vst [vmem:[%s473_s28 + $0x8] sm:$0xff] %v536_v2  ;;  %v540_v4 = vld [vmem:[%s4383_s0 + $0x30] sm:$0xff] }
  0x24   : > { %539 = vst [vmem:[%s473_s28 + $0x10] sm:$0xff] %v538_v3  ;;  %v542_v5 = vld [vmem:[%s4383_s0 + $0x40] sm:$0xff]  ;;  %v544_v6 = vld [vmem:[%s4383_s0 + $0x50] sm:$0xff]  ;;  %541 = vst [vmem:[%s473_s28 + $0x18] sm:$0xff] %v540_v4 }
  0x25   : > { %543 = vst [vmem:[%s473_s28 + $0x20] sm:$0xff] %v542_v5  ;;  %545 = vst [vmem:[%s473_s28 + $0x28] sm:$0xff] %v544_v6  ;;  %v546_v7 = vld [vmem:[%s4383_s0 + $0x60] sm:$0xff]  ;;  %v548_v8 = vld [vmem:[%s4383_s0 + $0x70] sm:$0xff] }
  0x26   : > { %v550_v9 = vld [vmem:[%s4383_s0 + $0x80] sm:$0xff]  ;;  %547 = vst [vmem:[%s473_s28 + $0x30] sm:$0xff] %v546_v7  ;;  %549 = vst [vmem:[%s473_s28 + $0x38] sm:$0xff] %v548_v8  ;;  %v552_v10 = vld [vmem:[%s4383_s0 + $0x90] sm:$0xff] }
  0x27   : > { %551 = vst [vmem:[%s473_s28 + $0x40] sm:$0xff] %v550_v9  ;;  %v554_v11 = vld [vmem:[%s4383_s0 + $0xa0] sm:$0xff]  ;;  %v556_v12 = vld [vmem:[%s4383_s0 + $0xb0] sm:$0xff]  ;;  %553 = vst [vmem:[%s473_s28 + $0x48] sm:$0xff] %v552_v10 }
  0x28   : > { %555 = vst [vmem:[%s473_s28 + $0x50] sm:$0xff] %v554_v11  ;;  %557 = vst [vmem:[%s473_s28 + $0x58] sm:$0xff] %v556_v12  ;;  %v558_v13 = vld [vmem:[%s4383_s0 + $0xc0] sm:$0xff]  ;;  %v560_v14 = vld [vmem:[%s4383_s0 + $0xd0] sm:$0xff] }
  0x29   : > { %v562_v15 = vld [vmem:[%s4383_s0 + $0xe0] sm:$0xff]  ;;  %559 = vst [vmem:[%s473_s28 + $0x60] sm:$0xff] %v558_v13  ;;  %561 = vst [vmem:[%s473_s28 + $0x68] sm:$0xff] %v560_v14  ;;  %v564_v16 = vld [vmem:[%s4383_s0 + $0xf0] sm:$0xff] }
  0x2a   : > { %563 = vst [vmem:[%s473_s28 + $0x70] sm:$0xff] %v562_v15  ;;  %565 = vst [vmem:[%s473_s28 + $0x78] sm:$0xff] %v564_v16 }
  0x2b PF: > { %571 = sbr.rel (!%p4361_p5) target bundleno = 61 (0x3d), region = 102  ;;  %s573_s20 = sand.u32 (%p4361_p5), 1, %s4152_s25  }
  0x2c   : > { %s3297_s21 = sshll.u32 (%p4361_p5), %s4156_s26, 3  ;;  %s3296_s22 = sshll.u32 (%p4361_p5), %s573_s20, 7 }
  0x2d   : > { %s5789_s1 = sld [smem:[#allocation25_spill]] (%p4361_p5)  ;;  %s575_s28 = scalar_lea.vmem (%p4361_p5), [#allocation6], %s3296_s22 }
  0x33   : > { %s4408_s27 = scalar_lea.vmem %s5789_s1, %s3297_s21 }
  0x34   : > { %v636_v17 = vld [vmem:[%s4408_s27] sm:$0xff]  ;;  %v638_v18 = vld [vmem:[%s4408_s27 + $0x10] sm:$0xff] }
  0x35   : > { %v640_v19 = vld [vmem:[%s4408_s27 + $0x20] sm:$0xff]  ;;  %637 = vst [vmem:[%s575_s28] sm:$0xff] %v636_v17  ;;  %639 = vst [vmem:[%s575_s28 + $0x8] sm:$0xff] %v638_v18  ;;  %v642_v20 = vld [vmem:[%s4408_s27 + $0x30] sm:$0xff] }
  0x36   : > { %641 = vst [vmem:[%s575_s28 + $0x10] sm:$0xff] %v640_v19  ;;  %v644_v21 = vld [vmem:[%s4408_s27 + $0x40] sm:$0xff]  ;;  %v646_v22 = vld [vmem:[%s4408_s27 + $0x50] sm:$0xff]  ;;  %643 = vst [vmem:[%s575_s28 + $0x18] sm:$0xff] %v642_v20 }
  0x37   : > { %645 = vst [vmem:[%s575_s28 + $0x20] sm:$0xff] %v644_v21  ;;  %647 = vst [vmem:[%s575_s28 + $0x28] sm:$0xff] %v646_v22  ;;  %v648_v23 = vld [vmem:[%s4408_s27 + $0x60] sm:$0xff]  ;;  %v650_v24 = vld [vmem:[%s4408_s27 + $0x70] sm:$0xff] }
  0x38   : > { %v652_v25 = vld [vmem:[%s4408_s27 + $0x80] sm:$0xff]  ;;  %649 = vst [vmem:[%s575_s28 + $0x30] sm:$0xff] %v648_v23  ;;  %651 = vst [vmem:[%s575_s28 + $0x38] sm:$0xff] %v650_v24  ;;  %v654_v26 = vld [vmem:[%s4408_s27 + $0x90] sm:$0xff] }
  0x39   : > { %653 = vst [vmem:[%s575_s28 + $0x40] sm:$0xff] %v652_v25  ;;  %v656_v27 = vld [vmem:[%s4408_s27 + $0xa0] sm:$0xff]  ;;  %v658_v28 = vld [vmem:[%s4408_s27 + $0xb0] sm:$0xff]  ;;  %655 = vst [vmem:[%s575_s28 + $0x48] sm:$0xff] %v654_v26 }
  0x3a   : > { %657 = vst [vmem:[%s575_s28 + $0x50] sm:$0xff] %v656_v27  ;;  %659 = vst [vmem:[%s575_s28 + $0x58] sm:$0xff] %v658_v28  ;;  %v660_v29 = vld [vmem:[%s4408_s27 + $0xc0] sm:$0xff]  ;;  %v662_v30 = vld [vmem:[%s4408_s27 + $0xd0] sm:$0xff] }
  0x3b   : > { %v664_v31 = vld [vmem:[%s4408_s27 + $0xe0] sm:$0xff]  ;;  %661 = vst [vmem:[%s575_s28 + $0x60] sm:$0xff] %v660_v29  ;;  %663 = vst [vmem:[%s575_s28 + $0x68] sm:$0xff] %v662_v30  ;;  %v666_v32 = vld [vmem:[%s4408_s27 + $0xf0] sm:$0xff] }
  0x3c   : > { %665 = vst [vmem:[%s575_s28 + $0x70] sm:$0xff] %v664_v31  ;;  %667 = vst [vmem:[%s575_s28 + $0x78] sm:$0xff] %v666_v32 }
  0x3d PF: > { %673 = sbr.rel (!%p4361_p5) target bundleno = 79 (0x4f), region = 140  ;;  %s675_s0 = sand.u32 (%p4361_p5), 1, %s4152_s25  }
  0x3e   : > { %s3299_s20 = sshll.u32 (%p4361_p5), %s4156_s26, 3  ;;  %s3298_s21 = sshll.u32 (%p4361_p5), %s675_s0, 7 }
  0x3f   : > { %s5790_s2 = sld [smem:[#allocation26_spill]] (%p4361_p5)  ;;  %s677_s17 = scalar_lea.vmem (%p4361_p5), [#allocation7], %s3298_s21 }
  0x45   : > { %s4433_s30 = scalar_lea.vmem %s5790_s2, %s3299_s20 }
  0x46   : > { %v738_v33 = vld [vmem:[%s4433_s30] sm:$0xff]  ;;  %v740_v34 = vld [vmem:[%s4433_s30 + $0x10] sm:$0xff] }
  0x47   : > { %v742_v35 = vld [vmem:[%s4433_s30 + $0x20] sm:$0xff]  ;;  %739 = vst [vmem:[%s677_s17] sm:$0xff] %v738_v33  ;;  %741 = vst [vmem:[%s677_s17 + $0x8] sm:$0xff] %v740_v34  ;;  %v744_v36 = vld [vmem:[%s4433_s30 + $0x30] sm:$0xff] }
  0x48   : > { %743 = vst [vmem:[%s677_s17 + $0x10] sm:$0xff] %v742_v35  ;;  %v746_v37 = vld [vmem:[%s4433_s30 + $0x40] sm:$0xff]  ;;  %v748_v38 = vld [vmem:[%s4433_s30 + $0x50] sm:$0xff]  ;;  %745 = vst [vmem:[%s677_s17 + $0x18] sm:$0xff] %v744_v36 }
  0x49   : > { %747 = vst [vmem:[%s677_s17 + $0x20] sm:$0xff] %v746_v37  ;;  %749 = vst [vmem:[%s677_s17 + $0x28] sm:$0xff] %v748_v38  ;;  %v750_v39 = vld [vmem:[%s4433_s30 + $0x60] sm:$0xff]  ;;  %v752_v40 = vld [vmem:[%s4433_s30 + $0x70] sm:$0xff] }
  0x4a   : > { %v754_v41 = vld [vmem:[%s4433_s30 + $0x80] sm:$0xff]  ;;  %751 = vst [vmem:[%s677_s17 + $0x30] sm:$0xff] %v750_v39  ;;  %753 = vst [vmem:[%s677_s17 + $0x38] sm:$0xff] %v752_v40  ;;  %v756_v42 = vld [vmem:[%s4433_s30 + $0x90] sm:$0xff] }
  0x4b   : > { %755 = vst [vmem:[%s677_s17 + $0x40] sm:$0xff] %v754_v41  ;;  %v758_v43 = vld [vmem:[%s4433_s30 + $0xa0] sm:$0xff]  ;;  %v760_v44 = vld [vmem:[%s4433_s30 + $0xb0] sm:$0xff]  ;;  %757 = vst [vmem:[%s677_s17 + $0x48] sm:$0xff] %v756_v42 }
  0x4c   : > { %759 = vst [vmem:[%s677_s17 + $0x50] sm:$0xff] %v758_v43  ;;  %761 = vst [vmem:[%s677_s17 + $0x58] sm:$0xff] %v760_v44  ;;  %v762_v45 = vld [vmem:[%s4433_s30 + $0xc0] sm:$0xff]  ;;  %v764_v46 = vld [vmem:[%s4433_s30 + $0xd0] sm:$0xff] }
  0x4d   : > { %v766_v47 = vld [vmem:[%s4433_s30 + $0xe0] sm:$0xff]  ;;  %763 = vst [vmem:[%s677_s17 + $0x60] sm:$0xff] %v762_v45  ;;  %765 = vst [vmem:[%s677_s17 + $0x68] sm:$0xff] %v764_v46  ;;  %v768_v48 = vld [vmem:[%s4433_s30 + $0xf0] sm:$0xff] }
  0x4e   : > { %767 = vst [vmem:[%s677_s17 + $0x70] sm:$0xff] %v766_v47  ;;  %769 = vst [vmem:[%s677_s17 + $0x78] sm:$0xff] %v768_v48 }
  0x4f PF: > { %p3300_p10 = scmp.ge.s32.totalorder %s4156_s26, 1  ;;  %p783_p11 = scmp.lt.s32.totalorder %s4156_s26, 3 }
  0x51   : > { %p784_p12 = pnand %p3300_p10, %p783_p11 }
  0x52   : > { %s5791_s4 = sld [smem:[#allocation28_spill]] (!%p784_p12)  ;;  %s5765_s21 = sand.u32 (!%p784_p12), 1, %s4148_s24  }
  0x53   : > { %787 = sbr.rel (%p784_p12) target bundleno = 1906 (0x772), region = 182  ;;  %s4462_s22 = sshll.u32 (!%p784_p12), %s5765_s21, 7 }
  0x54   : > { %s4465_s29 = scalar_lea.vmem (!%p784_p12), [#allocation5], %s4462_s22  ;;  %s4506_s0 = scalar_lea.vmem (!%p784_p12), [#allocation6], %s4462_s22 }
  0x55   : > { %s5792_s3 = sld [smem:[#allocation27_spill]] (!%p784_p12)  ;;  %s4743_s28 = scalar_lea.vmem (!%p784_p12), [#allocation8], %s4462_s22 }
  0x58   : > { %v895_v49 = vld [vmem:[%s5791_s4 + $0x8] sm:$0xff]  ;;  %v894_v50 = vld [vmem:[%s5791_s4] sm:$0xff]  ;;  %vm896_vm0 = vcmask 130048   ;;  %v880_v53 = vld [vmem:[%s4465_s29 + $0x10] sm:$0xff]  ;;  %vm1346_vm1 = vcmask 654336   ;;  %vm1468_vm2 = vcmask 785408  }
  0x59   : > { %3502 = vmatprep.subr.mxu0 %v895_v49  ;;  %v878_v51 = vld [vmem:[%s4465_s29] sm:$0xff]  ;;  %v879_v52 = vld [vmem:[%s4465_s29 + $0x8] sm:$0xff]  ;;  %v881_v54 = vld [vmem:[%s4465_s29 + $0x18] sm:$0xff] }
  0x5a   : > { %3503 = vmatpush3.msra.mxu0 %v895_v49  ;;  %3506 = vmatprep.mubr.msk.f32.mxu0 %vm896_vm0, %v878_v51  ;;  %v882_v55 = vld [vmem:[%s4465_s29 + $0x20] sm:$0xff]  ;;  %v883_v56 = vld [vmem:[%s4465_s29 + $0x28] sm:$0xff]  ;;  %v884_v57 = vld [vmem:[%s4465_s29 + $0x30] sm:$0xff] }
  0x5b   : > { %3504 = vmatprep.subr.mxu0 %v894_v50  ;;  %v885_v58 = vld [vmem:[%s4465_s29 + $0x38] sm:$0xff]  ;;  %v886_v59 = vld [vmem:[%s4465_s29 + $0x40] sm:$0xff]  ;;  %v887_v60 = vld [vmem:[%s4465_s29 + $0x48] sm:$0xff] }
  0x5c   : > { %3505 = vmatpush3.msra.mxu0 %v894_v50  ;;  %v888_v61 = vld [vmem:[%s4465_s29 + $0x50] sm:$0xff]  ;;  %v889_v62 = vld [vmem:[%s4465_s29 + $0x58] sm:$0xff]  ;;  %v890_v63 = vld [vmem:[%s4465_s29 + $0x60] sm:$0xff] }
  0x5d   : > { %3507 = vmatmul.mubr.msk.f32.vlgmr.msra.gmra.mxu0 %vm896_vm0, %v879_v52  ;;  %v891_v0 = vld [vmem:[%s4465_s29 + $0x68] sm:$0xff]  ;;  %v892_v1 = vld [vmem:[%s4465_s29 + $0x70] sm:$0xff]  ;;  %v893_v2 = vld [vmem:[%s4465_s29 + $0x78] sm:$0xff] }
  0x5e   : > { %3509 = vmatprep.mubr.msk.f32.mxu0 %vm896_vm0, %v880_v53  ;;  %v3857_v3 = vld [vmem:[%s5754_s8 + $0x20] sm:$0xff]   ;;  %v3858_v4 = vld [vmem:[%s5754_s8 + $0x18] sm:$0xff]   ;;  %v1287_v6 = vld [vmem:[%s4506_s0 + $0x28] sm:$0xff] }
  0x5f   : > { %v1286_v5 = vld [vmem:[%s4506_s0 + $0x20] sm:$0xff]  ;;  %3663 = vmatprep.subr.bf16.mxu1 %v3857_v3  ;;  %3530 = vmatprep.subr.bf16.mxu0 %v3857_v3  ;;  %v3859_v8 = vld [vmem:[%s5754_s8 + $0x10] sm:$0xff]   ;;  %v1289_v15 = vld [vmem:[%s4506_s0 + $0x38] sm:$0xff] }
  0x60   : > { %3668 = vmatpush3.bf16.msra.mxu1 %v3857_v3  ;;  %3531 = vmatpush3.bf16.msra.mxu0 %v3857_v3  ;;  %v1300_v7 = vpack.c.bf16 %v1287_v6, %v1286_v5  ;;  %v1282_v9 = vld [vmem:[%s4506_s0] sm:$0xff]  ;;  %v1283_v10 = vld [vmem:[%s4506_s0 + $0x8] sm:$0xff]  ;;  %v1288_v14 = vld [vmem:[%s4506_s0 + $0x30] sm:$0xff] }
  0x61   : > { %3510 = vmatmul.mubr.msk.f32.gmra.mxu0 %vm896_vm0, %v881_v54  ;;  %3664 = vmatprep.subr.bf16.mxu1 %v3858_v4  ;;  %v1298_v11 = vpack.c.bf16 %v1283_v10, %v1282_v9  ;;  %v3860_v12 = vld [vmem:[%s5754_s8 + $0x8] sm:$0xff]   ;;  %v3861_v13 = vld [vmem:[%s5754_s8] sm:$0xff]   ;;  %v1301_v18 = vpack.c.bf16 %v1289_v15, %v1288_v14  ;;  %v1292_v20 = vld [vmem:[%s4506_s0 + $0x50] sm:$0xff] }
  0x62   : > { %3512 = vmatprep.mubr.msk.f32.mxu0 %vm896_vm0, %v882_v55  ;;  %3532 = vmatprep.subr.bf16.mxu0 %v3858_v4  ;;  %v1290_v16 = vld [vmem:[%s4506_s0 + $0x40] sm:$0xff]  ;;  %v1291_v17 = vld [vmem:[%s4506_s0 + $0x48] sm:$0xff]  ;;  %v1293_v21 = vld [vmem:[%s4506_s0 + $0x58] sm:$0xff] }
  0x63   : > { %3544 = vmatprep.mubr.msk.bf16.mxu1 %vm1346_vm1, %v1300_v7  ;;  %v1302_v19 = vpack.c.bf16 %v1291_v17, %v1290_v16  ;;  %v1294_v22 = vld [vmem:[%s4506_s0 + $0x60] sm:$0xff]  ;;  %v1295_v23 = vld [vmem:[%s4506_s0 + $0x68] sm:$0xff]  ;;  %v1303_v24 = vpack.c.bf16 %v1293_v21, %v1292_v20  ;;  %v1284_v35 = vld [vmem:[%s4506_s0 + $0x10] sm:$0xff] }
  0x64   : > { %3669 = vmatpush3.bf16.msra.mxu1 %v3858_v4  ;;  %3533 = vmatpush3.bf16.msra.mxu0 %v3858_v4  ;;  %v1304_v25 = vpack.c.bf16 %v1295_v23, %v1294_v22  ;;  %v1285_v36 = vld [vmem:[%s4506_s0 + $0x18] sm:$0xff]  ;;  %v1296_v37 = vld [vmem:[%s4506_s0 + $0x70] sm:$0xff] }
  0x65   : > { %3513 = vmatmul.mubr.msk.f32.gmra.mxu0 %vm896_vm0, %v883_v56  ;;  %3665 = vmatprep.subr.bf16.mxu1 %v3859_v8  ;;  %v1299_v39 = vpack.c.bf16 %v1285_v36, %v1284_v35  ;;  %v1297_v40 = vld [vmem:[%s4506_s0 + $0x78] sm:$0xff]  ;;  %s3306_s0 = sshll.u32 %s4343_s14, 4 }
  0x66   : > { %3515 = vmatprep.mubr.msk.f32.mxu0 %vm896_vm0, %v884_v57  ;;  %3534 = vmatprep.subr.bf16.mxu0 %v3859_v8  ;;  %v1305_v42 = vpack.c.bf16 %v1297_v40, %v1296_v37  ;;  %p871_p13 = scmp.lt.s32.totalorder %s3306_s0, 31 }
  0x68   : > { %3670 = vmatpush3.bf16.msra.mxu1 %v3859_v8  ;;  %3535 = vmatpush3.bf16.msra.mxu0 %v3859_v8  ;;  %s5839_s0 = smov (!%p871_p13, %s3306_s0), 31 }
  0x69   : > { %3516 = vmatmul.mubr.msk.f32.gmra.mxu0 %vm896_vm0, %v885_v58  ;;  %3666 = vmatprep.subr.bf16.mxu1 %v3860_v12  ;;  %s3307_s20 = sshll.u32 %s5839_s0, 3  ;;  %s4746_s0 = scalar_lea.vmem [#allocation9], %s4462_s22 }
  0x6a   : > { %3518 = vmatprep.mubr.msk.f32.mxu0 %vm896_vm0, %v886_v59  ;;  %3536 = vmatprep.subr.bf16.mxu0 %v3860_v12  ;;  %s874_s17 = scalar_lea.vmem %s5792_s3, %s3307_s20  ;;  %s4796_s20 = smov 0  }
  0x6c   : > { %3671 = vmatpush3.bf16.msra.mxu1 %v3860_v12  ;;  %3537 = vmatpush3.bf16.msra.mxu0 %v3860_v12 }
  0x6d   : > { %3519 = vmatmul.mubr.msk.f32.gmra.mxu0 %vm896_vm0, %v887_v60  ;;  %3667 = vmatprep.subr.bf16.mxu1 %v3861_v13 }
  0x6e   : > { %3521 = vmatprep.mubr.msk.f32.mxu0 %vm896_vm0, %v888_v61  ;;  %3538 = vmatprep.subr.bf16.mxu0 %v3861_v13 }
  0x70   : > { %3672 = vmatpush3.bf16.msra.mxu1 %v3861_v13  ;;  %3539 = vmatpush3.bf16.msra.mxu0 %v3861_v13 }
  0x71   : > { %3522 = vmatmul.mubr.msk.f32.gmra.mxu0 %vm896_vm0, %v889_v62 }
  0x72   : > { %3524 = vmatprep.mubr.msk.f32.mxu0 %vm896_vm0, %v890_v63 }
  0x73   : > { %3545 = vmatmul.mubr.msk.bf16.vlgmr.msra.gmra.mxu1 %vm1346_vm1, %v1301_v18 }
  0x74   : > { %3548 = vmatprep.mubr.msk.bf16.mxu1 %vm1346_vm1, %v1302_v19 }
  0x75   : > { %3525 = vmatmul.mubr.msk.f32.gmra.mxu0 %vm896_vm0, %v891_v0 }
  0x76   : > { %3527 = vmatprep.mubr.msk.f32.mxu0 %vm896_vm0, %v892_v1 }
  0x79   : > { %3528 = vmatmul.mubr.msk.f32.gmra.mxu0 %vm896_vm0, %v893_v2 }
  0x7a   : > { %3540 = vmatprep.mubr.msk.bf16.mxu0 %vm1346_vm1, %v1298_v11 }
  0x7b   : > { %3549 = vmatmul.mubr.msk.bf16.gmra.mxu1 %vm1346_vm1, %v1303_v24 }
  0x7c   : > { %3552 = vmatprep.mubr.msk.bf16.mxu1 %vm1346_vm1, %v1304_v25 }
  0x7d   : > { %3541 = vmatmul.mubr.msk.bf16.vlgmr.msra.gmra.mxu0 %vm1346_vm1, %v1299_v39 }
  0x83   : > { %3553 = vmatmul.mubr.msk.bf16.gmra.mxu1 %vm1346_vm1, %v1305_v42 }
 0x11d   : > { %v3508_v26 = vpop.f32.mrf.mxu0 }
 0x11e   : > { %v1093_v27 = vsel %vm896_vm0, %v3508_v26, -inf }
 0x11f   : > { %1094 = vmax.xlane.f32.xlu0 %v1093_v27  ;;  %v1011_v28 = vpop.f32.mrf.mxu0 }
 0x120   : > { %v1090_v30 = vsel %vm896_vm0, %v1011_v28, -inf }
 0x121   : > { %v3511_v29 = vpop.f32.mrf.mxu0 }
 0x122   : > { %v1099_v31 = vsel %vm896_vm0, %v3511_v29, -inf }
 0x123   : > { %1091 = vmax.xlane.f32.xlu0 %v1090_v30  ;;  %1100 = vmax.xlane.f32.xlu1 %v1099_v31  ;;  %v1021_v32 = vpop.f32.mrf.mxu0 }
 0x124   : > { %v1096_v34 = vsel %vm896_vm0, %v1021_v32, -inf }
 0x125   : > { %v4538_v33 = vpop.f32.mrf.mxu0 }
 0x126   : > { %v1105_v44 = vsel %vm896_vm0, %v4538_v33, -inf }
 0x127   : > { %1097 = vmax.xlane.f32.xlu1 %v1096_v34  ;;  %v1031_v38 = vpop.f32.mrf.mxu0 }
 0x128   : > { %v1102_v41 = vsel %vm896_vm0, %v1031_v38, -inf }
 0x129   : > { %1103 = vmax.xlane.f32.xlu0 %v1102_v41  ;;  %v4546_v43 = vpop.f32.mrf.mxu0 }
 0x12a   : > { %v1111_v48 = vsel %vm896_vm0, %v4546_v43, -inf }
 0x12b   : > { %1106 = vmax.xlane.f32.xlu1 %v1105_v44  ;;  %v1041_v45 = vpop.f32.mrf.mxu0 }
 0x12c   : > { %v1108_v46 = vsel %vm896_vm0, %v1041_v45, -inf }
 0x12d   : > { %1109 = vmax.xlane.f32.xlu0 %v1108_v46  ;;  %v4553_v47 = vpop.f32.mrf.mxu0 }
 0x12e   : > { %v1117_v52 = vsel %vm896_vm0, %v4553_v47, -inf }
 0x12f   : > { %1112 = vmax.xlane.f32.xlu1 %v1111_v48  ;;  %v1051_v49 = vpop.f32.mrf.mxu0 }
 0x130   : > { %v1114_v50 = vsel %vm896_vm0, %v1051_v49, -inf }
 0x131   : > { %1115 = vmax.xlane.f32.xlu0 %v1114_v50  ;;  %v4558_v51 = vpop.f32.mrf.mxu0 }
 0x132   : > { %v1123_v56 = vsel %vm896_vm0, %v4558_v51, -inf }
 0x133   : > { %1118 = vmax.xlane.f32.xlu1 %v1117_v52  ;;  %v4562_v53 = vpop.f32.mrf.mxu0 }
 0x134   : > { %v1120_v54 = vsel %vm896_vm0, %v4562_v53, -inf }
 0x135   : > { %1121 = vmax.xlane.f32.xlu0 %v1120_v54  ;;  %v4566_v55 = vpop.f32.mrf.mxu0 }
 0x136   : > { %v1129_v60 = vsel %vm896_vm0, %v4566_v55, -inf }
 0x137   : > { %1124 = vmax.xlane.f32.xlu1 %v1123_v56  ;;  %v4570_v57 = vpop.f32.mrf.mxu0 }
 0x138   : > { %v1126_v58 = vsel %vm896_vm0, %v4570_v57, -inf }
 0x139   : > { %1127 = vmax.xlane.f32.xlu0 %v1126_v58  ;;  %v4574_v59 = vpop.f32.mrf.mxu0 }
 0x13a   : > { %v1135_v63 = vsel %vm896_vm0, %v4574_v59, -inf }
 0x13b   : > { %1130 = vmax.xlane.f32.xlu1 %v1129_v60  ;;  %v4578_v61 = vpop.f32.mrf.mxu0 }
 0x13c   : > { %v1132_v62 = vsel %vm896_vm0, %v4578_v61, -inf }
 0x13d   : > { %1133 = vmax.xlane.f32.xlu0 %v1132_v62 }
 0x13f   : > { %1136 = vmax.xlane.f32.xlu1 %v1135_v63 }
 0x1a8   : > { %v1095_v0 = vpop.xlane.xlu0 %1094 }
 0x1a9   : > { %v1139_v1 = vsub.f32 %v3508_v26, %v1095_v0 }
 0x1ab   : > { %v1156_v2 = vmul.f32 1.442695, %v1139_v1 }
 0x1ac   : > { %v1092_v3 = vpop.xlane.xlu0 %1091  ;;  %v1101_v4 = vpop.xlane.xlu1 %1100 }
 0x1ad   : > { %3862 = vpow2.f32 %v1156_v2  ;;  %v1138_v5 = vsub.f32 %v1011_v28, %v1092_v3  ;;  %v1141_v6 = vsub.f32 %v3511_v29, %v1101_v4 }
 0x1af   : > { %v1154_v7 = vmul.f32 1.442695, %v1138_v5  ;;  %v1160_v8 = vmul.f32 1.442695, %v1141_v6 }
 0x1b0   : > { %v1098_v9 = vpop.xlane.xlu1 %1097 }
 0x1b1   : > { %3864 = vpow2.f32 %v1154_v7  ;;  %v1140_v10 = vsub.f32 %v1021_v32, %v1098_v9 }
 0x1b2   : > { %3866 = vpow2.f32 %v1160_v8  ;;  %v1104_v11 = vpop.xlane.xlu0 %1103 }
 0x1b3   : > { %v1158_v12 = vmul.f32 1.442695, %v1140_v10  ;;  %v1142_v13 = vsub.f32 %v1031_v38, %v1104_v11 }
 0x1b4   : > { %v1107_v14 = vpop.xlane.xlu1 %1106 }
 0x1b5   : > { %3868 = vpow2.f32 %v1158_v12  ;;  %v1162_v15 = vmul.f32 1.442695, %v1142_v13  ;;  %v1143_v16 = vsub.f32 %v4538_v33, %v1107_v14  ;;  %v3546_v14 = vpop.f32.mrf.mxu1 }
 0x1b6   : > { %v1110_v17 = vpop.xlane.xlu0 %1109  ;;  %1475 = vst.msk [vmem:[#allocation3 + $0x30] sm:$0xff] %vm1468_vm2, %v3546_v14 }
 0x1b7   : > { %3870 = vpow2.f32 %v1162_v15  ;;  %v1164_v18 = vmul.f32 1.442695, %v1143_v16  ;;  %v1144_v19 = vsub.f32 %v1041_v45, %v1110_v17  ;;  %v1421_v17 = vpop.f32.mrf.mxu1 }
 0x1b8   : > { %v1113_v20 = vpop.xlane.xlu1 %1112  ;;  %1473 = vst.msk [vmem:[#allocation3 + $0x20] sm:$0xff] %vm1468_vm2, %v1421_v17 }
 0x1b9   : > { %3872 = vpow2.f32 %v1164_v18  ;;  %v1166_v21 = vmul.f32 1.442695, %v1144_v19  ;;  %v1145_v22 = vsub.f32 %v4546_v43, %v1113_v20  ;;  %v3547_v18 = vpop.f32.mrf.mxu1 }
 0x1ba   : > { %v4586_v23 = vpop.eup %3862  ;;  %v1116_v24 = vpop.xlane.xlu0 %1115  ;;  %1476 = vst.msk [vmem:[#allocation3 + $0x38] sm:$0xff] %vm1468_vm2, %v3547_v18 }
 0x1bb   : > { %3874 = vpow2.f32 %v1166_v21  ;;  %v1168_v25 = vmul.f32 1.442695, %v1145_v22  ;;  %v1146_v26 = vsub.f32 %v1051_v49, %v1116_v24  ;;  %v1189_v27 = vsel %vm896_vm0, %v4586_v23, 0.0  ;;  %v1424_v19 = vpop.f32.mrf.mxu1 }
 0x1bc   : > { %v1119_v28 = vpop.xlane.xlu1 %1118  ;;  %1190 = vadd.xlane.f32.xlu1 %v1189_v27  ;;  %1474 = vst.msk [vmem:[#allocation3 + $0x28] sm:$0xff] %vm1468_vm2, %v1424_v19 }
 0x1bd   : > { %3876 = vpow2.f32 %v1168_v25  ;;  %v1170_v29 = vmul.f32 1.442695, %v1146_v26  ;;  %v1147_v30 = vsub.f32 %v4553_v47, %v1119_v28  ;;  %v3550_v20 = vpop.f32.mrf.mxu1  ;;  %v3542_v25 = vpop.f32.mrf.mxu0 }
 0x1be   : > { %v4591_v31 = vpop.eup %3864  ;;  %v1122_v32 = vpop.xlane.xlu0 %1121  ;;  %1479 = vst.msk [vmem:[#allocation3 + $0x50] sm:$0xff] %vm1468_vm2, %v3550_v20  ;;  %1471 = vst.msk [vmem:[#allocation3 + $0x10] sm:$0xff] %vm1468_vm2, %v3542_v25 }
 0x1bf   : > { %v4593_v33 = vpop.eup %3866  ;;  %3878 = vpow2.f32 %v1170_v29  ;;  %v1172_v34 = vmul.f32 1.442695, %v1147_v30  ;;  %v1148_v35 = vsub.f32 %v4562_v53, %v1122_v32  ;;  %v1186_v36 = vsel %vm896_vm0, %v4591_v31, 0.0  ;;  %v1437_v21 = vpop.f32.mrf.mxu1 }
 0x1c0   : > { %v1125_v37 = vpop.xlane.xlu1 %1124  ;;  %v1195_v38 = vsel %vm896_vm0, %v4593_v33, 0.0  ;;  %1187 = vadd.xlane.f32.xlu0 %v1186_v36  ;;  %1477 = vst.msk [vmem:[#allocation3 + $0x40] sm:$0xff] %vm1468_vm2, %v1437_v21  ;;  %v1405_v27 = vpop.f32.mrf.mxu0  ;;  %v4679_v36 = vld [vmem:[%s874_s17 + $0x8] sm:$0xff]  }
 0x1c1   : > { %3880 = vpow2.f32 %v1172_v34  ;;  %v1174_v39 = vmul.f32 1.442695, %v1148_v35  ;;  %v1149_v40 = vsub.f32 %v4558_v51, %v1125_v37  ;;  %1196 = vadd.xlane.f32.xlu1 %v1195_v38  ;;  %v3551_v22 = vpop.f32.mrf.mxu1  ;;  %1469 = vst.msk [vmem:[#allocation3] sm:$0xff] %vm1468_vm2, %v1405_v27  ;;  %v4677_v35 = vld [vmem:[%s874_s17] sm:$0xff]   ;;  %v4681_v37 = vld [vmem:[%s874_s17 + $0x10] sm:$0xff]   ;;  %v4683_v38 = vld [vmem:[%s874_s17 + $0x18] sm:$0xff]  }
 0x1c2   : > { %v4601_v41 = vpop.eup %3868  ;;  %v1128_v42 = vpop.xlane.xlu0 %1127  ;;  %1480 = vst.msk [vmem:[#allocation3 + $0x58] sm:$0xff] %vm1468_vm2, %v3551_v22 }
 0x1c3   : > { %3882 = vpow2.f32 %v1174_v39  ;;  %v1176_v43 = vmul.f32 1.442695, %v1149_v40  ;;  %v1150_v44 = vsub.f32 %v4570_v57, %v1128_v42  ;;  %v1192_v45 = vsel %vm896_vm0, %v4601_v41, 0.0  ;;  %v1440_v24 = vpop.f32.mrf.mxu1  ;;  %v3543_v29 = vpop.f32.mrf.mxu0  ;;  %v4685_v39 = vld [vmem:[%s874_s17 + $0x20] sm:$0xff]   ;;  %v4687_v40 = vld [vmem:[%s874_s17 + $0x28] sm:$0xff]   ;;  %v4689_v42 = vld [vmem:[%s874_s17 + $0x30] sm:$0xff]  }
 0x1c4   : > { %v4606_v46 = vpop.eup %3870  ;;  %v1131_v47 = vpop.xlane.xlu1 %1130  ;;  %1193 = vadd.xlane.f32.xlu0 %v1192_v45  ;;  %1478 = vst.msk [vmem:[#allocation3 + $0x48] sm:$0xff] %vm1468_vm2, %v1440_v24  ;;  %1472 = vst.msk [vmem:[#allocation3 + $0x18] sm:$0xff] %vm1468_vm2, %v3543_v29  ;;  %v4695_v45 = vld [vmem:[%s874_s17 + $0x48] sm:$0xff]  }
 0x1c5   : > { %3884 = vpow2.f32 %v1176_v43  ;;  %v1178_v48 = vmul.f32 1.442695, %v1150_v44  ;;  %v1151_v49 = vsub.f32 %v4566_v55, %v1131_v47  ;;  %v1198_v52 = vsel %vm896_vm0, %v4606_v46, 0.0  ;;  %v3554_v26 = vpop.f32.mrf.mxu1  ;;  %v1408_v32 = vpop.f32.mrf.mxu0  ;;  %v4691_v43 = vld [vmem:[%s874_s17 + $0x38] sm:$0xff]   ;;  %v4693_v44 = vld [vmem:[%s874_s17 + $0x40] sm:$0xff]   ;;  %v4697_v47 = vld [vmem:[%s874_s17 + $0x50] sm:$0xff]  }
 0x1c6   : > { %v4609_v50 = vpop.eup %3872  ;;  %v1134_v51 = vpop.xlane.xlu0 %1133  ;;  %1483 = vst.msk [vmem:[#allocation3 + $0x70] sm:$0xff] %vm1468_vm2, %v3554_v26  ;;  %1470 = vst.msk [vmem:[#allocation3 + $0x8] sm:$0xff] %vm1468_vm2, %v1408_v32 }
 0x1c7   : > { %3886 = vpow2.f32 %v1178_v48  ;;  %v1180_v53 = vmul.f32 1.442695, %v1151_v49  ;;  %v1152_v54 = vsub.f32 %v4578_v61, %v1134_v51  ;;  %v1201_v56 = vsel %vm896_vm0, %v4609_v50, 0.0  ;;  %v1453_v28 = vpop.f32.mrf.mxu1  ;;  %v4699_v48 = vld [vmem:[%s874_s17 + $0x58] sm:$0xff]   ;;  %v4701_v49 = vld [vmem:[%s874_s17 + $0x60] sm:$0xff]   ;;  %v4703_v51 = vld [vmem:[%s874_s17 + $0x68] sm:$0xff]  }
 0x1c8   : > { %v4616_v57 = vpop.eup %3874  ;;  %1202 = vadd.xlane.f32.xlu1 %v1201_v56  ;;  %v1137_v58 = vpop.xlane.xlu1 %1136  ;;  %1199 = vadd.xlane.f32.xlu0 %v1198_v52  ;;  %1481 = vst.msk [vmem:[#allocation3 + $0x60] sm:$0xff] %vm1468_vm2, %v1453_v28  ;;  %v4705_v52 = vld [vmem:[%s874_s17 + $0x70] sm:$0xff]  }
 0x1c9   : > { %3888 = vpow2.f32 %v1180_v53  ;;  %v1182_v55 = vmul.f32 1.442695, %v1152_v54  ;;  %v1153_v60 = vsub.f32 %v4574_v59, %v1137_v58  ;;  %v1204_v61 = vsel %vm896_vm0, %v4616_v57, 0.0  ;;  %v3555_v30 = vpop.f32.mrf.mxu1  ;;  %v4707_v53 = vld [vmem:[%s874_s17 + $0x78] sm:$0xff]  }
 0x1ca   : > { %v4619_v62 = vpop.eup %3876  ;;  %1484 = vst.msk [vmem:[#allocation3 + $0x78] sm:$0xff] %vm1468_vm2, %v3555_v30 }
 0x1cb   : > { %3890 = vpow2.f32 %v1182_v55  ;;  %v1184_v63 = vmul.f32 1.442695, %v1153_v60  ;;  %v1207_v0 = vsel %vm896_vm0, %v4619_v62, 0.0  ;;  %v1456_v34 = vpop.f32.mrf.mxu1 }
 0x1cc   : > { %v4625_v1 = vpop.eup %3878  ;;  %1208 = vadd.xlane.f32.xlu1 %v1207_v0  ;;  %1205 = vadd.xlane.f32.xlu0 %v1204_v61  ;;  %1482 = vst.msk [vmem:[#allocation3 + $0x68] sm:$0xff] %vm1468_vm2, %v1456_v34 }
 0x1cd   : > { %3892 = vpow2.f32 %v1184_v63  ;;  %v1210_v3 = vsel %vm896_vm0, %v4625_v1, 0.0 }
 0x1ce   : > { %v4627_v2 = vpop.eup %3880 }
 0x1cf   : > { %v1213_v59 = vsel %vm896_vm0, %v4627_v2, 0.0 }
 0x1d0   : > { %v4633_v4 = vpop.eup %3882  ;;  %1214 = vadd.xlane.f32.xlu1 %v1213_v59  ;;  %1211 = vadd.xlane.f32.xlu0 %v1210_v3 }
 0x1d1   : > { %v1216_v7 = vsel %vm896_vm0, %v4633_v4, 0.0 }
 0x1d2   : > { %v4635_v5 = vpop.eup %3884 }
 0x1d3   : > { %v1219_v6 = vsel %vm896_vm0, %v4635_v5, 0.0 }
 0x1d4   : > { %v4641_v8 = vpop.eup %3886  ;;  %1220 = vadd.xlane.f32.xlu1 %v1219_v6  ;;  %1217 = vadd.xlane.f32.xlu0 %v1216_v7 }
 0x1d5   : > { %v1222_v11 = vsel %vm896_vm0, %v4641_v8, 0.0 }
 0x1d6   : > { %v4643_v9 = vpop.eup %3888 }
 0x1d7   : > { %v1225_v10 = vsel %vm896_vm0, %v4643_v9, 0.0 }
 0x1d8   : > { %v4649_v12 = vpop.eup %3890  ;;  %1226 = vadd.xlane.f32.xlu1 %v1225_v10  ;;  %1223 = vadd.xlane.f32.xlu0 %v1222_v11 }
 0x1d9   : > { %v1228_v16 = vsel %vm896_vm0, %v4649_v12, 0.0 }
 0x1da   : > { %v4651_v13 = vpop.eup %3892 }
 0x1db   : > { %v1231_v15 = vsel %vm896_vm0, %v4651_v13, 0.0 }
 0x1dc   : > { %1232 = vadd.xlane.f32.xlu1 %v1231_v15  ;;  %1229 = vadd.xlane.f32.xlu0 %v1228_v16 }
 0x245   : > { %v1191_v54 = vpop.xlane.xlu1 %1190 }
 0x246   : > { %3894 = vrcp.f32 %v1191_v54 }
 0x249   : > { %v1188_v56 = vpop.xlane.xlu0 %1187 }
 0x24a   : > { %v1197_v58 = vpop.xlane.xlu1 %1196  ;;  %3896 = vrcp.f32 %v1188_v56 }
 0x24b   : > { %3898 = vrcp.f32 %v1197_v58 }
 0x24d   : > { %v1194_v55 = vpop.xlane.xlu0 %1193 }
 0x24e   : > { %3900 = vrcp.f32 %v1194_v55 }
 0x251   : > { %v1203_v60 = vpop.xlane.xlu1 %1202  ;;  %v1200_v63 = vpop.xlane.xlu0 %1199 }
 0x252   : > { %3902 = vrcp.f32 %v1203_v60 }
 0x253   : > { %v3895_v0 = vpop.eup %3894  ;;  %3904 = vrcp.f32 %v1200_v63 }
 0x254   : > { %v1251_v61 = vmul.f32 %v3895_v0, %v4586_v23 }
 0x255   : > { %v1209_v59 = vpop.xlane.xlu1 %1208  ;;  %v1206_v3 = vpop.xlane.xlu0 %1205 }
 0x256   : > { %1267 = vst.msk [vmem:[#allocation2 + $0x8] sm:$0xff] %vm896_vm0, %v1251_v61  ;;  %3906 = vrcp.f32 %v1209_v59 }
 0x257   : > { %v3897_v6 = vpop.eup %3896  ;;  %3908 = vrcp.f32 %v1206_v3 }
 0x258   : > { %v3899_v7 = vpop.eup %3898  ;;  %v1250_v10 = vmul.f32 %v3897_v6, %v4591_v31 }
 0x259   : > { %v1253_v11 = vmul.f32 %v3899_v7, %v4593_v33  ;;  %v1215_v14 = vpop.xlane.xlu1 %1214  ;;  %v1212_v15 = vpop.xlane.xlu0 %1211 }
 0x25a   : > { %1266 = vst.msk [vmem:[#allocation2] sm:$0xff] %vm896_vm0, %v1250_v10  ;;  %3910 = vrcp.f32 %v1215_v14 }
 0x25b   : > { %v3901_v16 = vpop.eup %3900  ;;  %1269 = vst.msk [vmem:[#allocation2 + $0x18] sm:$0xff] %vm896_vm0, %v1253_v11  ;;  %3912 = vrcp.f32 %v1212_v15 }
 0x25c   : > { %v1252_v23 = vmul.f32 %v3901_v16, %v4601_v41 }
 0x25d   : > { %v1221_v17 = vpop.xlane.xlu1 %1220  ;;  %v1218_v18 = vpop.xlane.xlu0 %1217 }
 0x25e   : > { %1268 = vst.msk [vmem:[#allocation2 + $0x10] sm:$0xff] %vm896_vm0, %v1252_v23  ;;  %3914 = vrcp.f32 %v1221_v17 }
 0x25f   : > { %v3903_v19 = vpop.eup %3902  ;;  %3916 = vrcp.f32 %v1218_v18 }
 0x260   : > { %v3905_v31 = vpop.eup %3904  ;;  %v1255_v33 = vmul.f32 %v3903_v19, %v4609_v50 }
 0x261   : > { %v1254_v20 = vmul.f32 %v3905_v31, %v4606_v46  ;;  %v1227_v21 = vpop.xlane.xlu1 %1226  ;;  %v1224_v22 = vpop.xlane.xlu0 %1223 }
 0x262   : > { %1271 = vst.msk [vmem:[#allocation2 + $0x28] sm:$0xff] %vm896_vm0, %v1255_v33  ;;  %3918 = vrcp.f32 %v1227_v21 }
 0x263   : > { %v3907_v24 = vpop.eup %3906  ;;  %1270 = vst.msk [vmem:[#allocation2 + $0x20] sm:$0xff] %vm896_vm0, %v1254_v20  ;;  %3920 = vrcp.f32 %v1224_v22 }
 0x264   : > { %v3909_v41 = vpop.eup %3908  ;;  %v1257_v25 = vmul.f32 %v3907_v24, %v4619_v62 }
 0x265   : > { %v1256_v26 = vmul.f32 %v3909_v41, %v4616_v57  ;;  %v1233_v27 = vpop.xlane.xlu1 %1232  ;;  %v1230_v28 = vpop.xlane.xlu0 %1229 }
 0x266   : > { %1273 = vst.msk [vmem:[#allocation2 + $0x38] sm:$0xff] %vm896_vm0, %v1257_v25  ;;  %3922 = vrcp.f32 %v1233_v27 }
 0x267   : > { %v3911_v46 = vpop.eup %3910  ;;  %1272 = vst.msk [vmem:[#allocation2 + $0x30] sm:$0xff] %vm896_vm0, %v1256_v26  ;;  %3924 = vrcp.f32 %v1230_v28 }
 0x268   : > { %v3913_v50 = vpop.eup %3912  ;;  %v1259_v29 = vmul.f32 %v3911_v46, %v4627_v2 }
 0x269   : > { %v1258_v30 = vmul.f32 %v3913_v50, %v4625_v1 }
 0x26a   : > { %1275 = vst.msk [vmem:[#allocation2 + $0x48] sm:$0xff] %vm896_vm0, %v1259_v29 }
 0x26b   : > { %v3915_v32 = vpop.eup %3914  ;;  %1274 = vst.msk [vmem:[#allocation2 + $0x40] sm:$0xff] %vm896_vm0, %v1258_v30 }
 0x26c   : > { %v3917_v57 = vpop.eup %3916  ;;  %v1261_v62 = vmul.f32 %v3915_v32, %v4635_v5 }
 0x26d   : > { %v1260_v34 = vmul.f32 %v3917_v57, %v4633_v4 }
 0x26e   : > { %1277 = vst.msk [vmem:[#allocation2 + $0x58] sm:$0xff] %vm896_vm0, %v1261_v62 }
 0x26f   : > { %v3919_v54 = vpop.eup %3918  ;;  %1276 = vst.msk [vmem:[#allocation2 + $0x50] sm:$0xff] %vm896_vm0, %v1260_v34 }
 0x270   : > { %v3921_v2 = vpop.eup %3920  ;;  %v1263_v1 = vmul.f32 %v3919_v54, %v4643_v9 }
 0x271   : > { %v1262_v56 = vmul.f32 %v3921_v2, %v4641_v8 }
 0x272   : > { %1279 = vst.msk [vmem:[#allocation2 + $0x68] sm:$0xff] %vm896_vm0, %v1263_v1 }
 0x273   : > { %v3923_v58 = vpop.eup %3922  ;;  %1278 = vst.msk [vmem:[#allocation2 + $0x60] sm:$0xff] %vm896_vm0, %v1262_v56 }
 0x274   : > { %v3925_v5 = vpop.eup %3924  ;;  %v1265_v4 = vmul.f32 %v3923_v58, %v4651_v13 }
 0x275   : > { %v1264_v55 = vmul.f32 %v3925_v5, %v4649_v12 }
 0x276   : > { %1281 = vst.msk [vmem:[#allocation2 + $0x78] sm:$0xff] %vm896_vm0, %v1265_v4 }
 0x277   : > { %1280 = vst.msk [vmem:[#allocation2 + $0x70] sm:$0xff] %vm896_vm0, %v1264_v55 }
 0x278 LB: >> { %5793 = vst [vmem:[#allocation14_spill] sm:$0xff] %v4160_v53  ;;  %5794 = vst [vmem:[#allocation15_spill] sm:$0xff] %v4164_v52  ;;  %v4852_v8 = vld [vmem:[%s5751_s5] sm:$0xff]  ;;  %vm1542_vm3 = vcmask 64512   ;;  %s4857_s17 = sshll.u32 %s4224_s20, 3  ;;  %v4867_v13 = vld [vmem:[%s5751_s5 + $0x8] sm:$0xff]  ;;  %v2257_v18 = vpack.c.bf16 %v4216_v36, %v4220_v35  ;;  %v2258_v31 = vpack.c.bf16 %v4208_v38, %v4212_v37  ;;  %v2259_v33 = vpack.c.bf16 %v4200_v40, %v4204_v39  ;;  %s4224_s20 = sphi %s4796_s20, %s1506_s20   ;;  %v4220_v35 = vphi %v4677_v35, %v5831_v35   ;;  %v4216_v36 = vphi %v4679_v36, %v5830_v36   ;;  %v4212_v37 = vphi %v4681_v37, %v5829_v37   ;;  %v4208_v38 = vphi %v4683_v38, %v5828_v38   ;;  %v4204_v39 = vphi %v4685_v39, %v5827_v39   ;;  %v4200_v40 = vphi %v4687_v40, %v5826_v40   ;;  %v4196_v42 = vphi %v4689_v42, %v5825_v42   ;;  %v4192_v43 = vphi %v4691_v43, %v5824_v43   ;;  %v4188_v44 = vphi %v4693_v44, %v5823_v44   ;;  %v4184_v45 = vphi %v4695_v45, %v5822_v45   ;;  %v4180_v47 = vphi %v4697_v47, %v5821_v47   ;;  %v4176_v48 = vphi %v4699_v48, %v5820_v48   ;;  %v4172_v49 = vphi %v4701_v49, %v5819_v49   ;;  %v4168_v51 = vphi %v4703_v51, %v5818_v51   ;;  %v4164_v52 = vphi %v4705_v52, %v5817_v52   ;;  %v4160_v53 = vphi %v4707_v53, %v5816_v53  }
 0x279   : >> { %5795 = vst [vmem:[#allocation16_spill] sm:$0xff] %v4168_v51  ;;  %5796 = vst [vmem:[#allocation17_spill] sm:$0xff] %v4172_v49  ;;  %3558 = vmatprep.mubr.msk.f32.mxu0 %vm1542_vm3, %v4852_v8  ;;  %v1531_v9 = vld [vmem:[%s5751_s5 + $0x40] sm:$0xff]  ;;  %s1540_s1 = scalar_lea.vmem [#allocation2], %s4857_s17  ;;  %v4872_v60 = vld [vmem:[%s5751_s5 + $0x10] sm:$0xff]  ;;  %s2023_s27 = scalar_lea.vmem [#allocation3], %s4857_s17  ;;  %v2260_v20 = vpack.c.bf16 %v4192_v43, %v4196_v42  ;;  %v2261_v21 = vpack.c.bf16 %v4184_v45, %v4188_v44  ;;  %v2262_v22 = vpack.c.bf16 %v4176_v48, %v4180_v47 }
 0x27a   : >> { %5797 = vst [vmem:[#allocation18_spill] sm:$0xff] %v4176_v48  ;;  %5798 = vst [vmem:[#allocation19_spill] sm:$0xff] %v4180_v47  ;;  %3631 = vmatprep.mubr.msk.f32.mxu1 %vm1542_vm3, %v1531_v9  ;;  %v1532_v63 = vld [vmem:[%s5751_s5 + $0x48] sm:$0xff]  ;;  %v4878_v0 = vld [vmem:[%s2023_s27] sm:$0xff]  ;;  %vm1855_vm4 = vcmask 261120   ;;  %v2263_v24 = vpack.c.bf16 %v4168_v51, %v4172_v49  ;;  %v2264_v41 = vpack.c.bf16 %v4160_v53, %v4164_v52  ;;  %vm4227_vm5 = vmmov 0   ;;  %s2004_s29 = scalar_lea.vmem %s4743_s28, %s4857_s17 [#allocation8] }
 0x27b   : >> { %5799 = vst [vmem:[#allocation20_spill] sm:$0xff] %v4184_v45  ;;  %5800 = vst [vmem:[#allocation21_spill] sm:$0xff] %v4188_v44  ;;  %3673 = vmatprep.subr.mxu1 %v4878_v0  ;;  %v3926_v61 = vld [vmem:[%s5756_s10 + $0x8] sm:$0xff]   ;;  %v3927_v59 = vld [vmem:[%s5756_s10] sm:$0xff]   ;;  %s4228_s21 = smov 64   ;;  %s4229_s3 = smov 96  }
 0x27c   : >> { %5801 = vst [vmem:[#allocation22_spill] sm:$0xff] %v4192_v43  ;;  %5802 = vst [vmem:[#allocation23_spill] sm:$0xff] %v4196_v42  ;;  %3674 = vmatpush3.msra.mxu1 %v4878_v0  ;;  %v4895_v3 = vld [vmem:[%s5751_s5 + $0x18] sm:$0xff]  ;;  %v1533_v6 = vld [vmem:[%s5751_s5 + $0x50] sm:$0xff]  ;;  %s4230_s4 = smov 32   ;;  %s5814_s30 = scalar_lea.vmem [#allocation7], %s4462_s22 }
 0x27d   : >> { %3632 = vmatmul.mubr.msk.f32.vlgmr.msra.gmra.mxu1 %vm1542_vm3, %v1532_v63  ;;  %v4904_v7 = vld [vmem:[%s5751_s5 + $0x20] sm:$0xff]  ;;  %3643 = vmatprep.subr.bf16.mxu1 %v3926_v61  ;;  %v1534_v10 = vld [vmem:[%s5751_s5 + $0x58] sm:$0xff]  ;;  %v4917_v11 = vld [vmem:[%s5751_s5 + $0x28] sm:$0xff]  ;;  %vm1985_vm6 = vcmask 326656   ;;  %vm2005_vm7 = vcmask 7168   ;;  %s1506_s20 = sadd.s32 1, %s4224_s20  }
 0x27e   : >> { %v1541_v12 = vld [vmem:[%s1540_s1] sm:$0xff]  ;;  %3634 = vmatprep.mubr.msk.f32.mxu1 %vm1542_vm3, %v1533_v6  ;;  %3644 = vmatpush3.bf16.msra.mxu1 %v3926_v61  ;;  %v4926_v15 = vld [vmem:[%s5751_s5 + $0x30] sm:$0xff]  ;;  %v1536_v16 = vld [vmem:[%s5751_s5 + $0x68] sm:$0xff]  ;;  %p5600_p0 = scmp.ge.s32.totalorder %s1506_s20, 16  }
 0x27f   : >> { %3556 = vmatprep.subr.mxu0 %v1541_v12  ;;  %3645 = vmatprep.subr.bf16.mxu1 %v3927_v59  ;;  %v1535_v14 = vld [vmem:[%s5751_s5 + $0x60] sm:$0xff]  ;;  %v4939_v23 = vld [vmem:[%s5751_s5 + $0x38] sm:$0xff]  ;;  %v1537_v17 = vld [vmem:[%s5751_s5 + $0x70] sm:$0xff]  ;;  %s5832_s22 = sand.u32 (%p5600_p0), 1, %s4148_s24  }
 0x280   : >> { %3557 = vmatpush3.msra.mxu0 %v1541_v12  ;;  %v1538_v19 = vld [vmem:[%s5751_s5 + $0x78] sm:$0xff]  ;;  %v1749_v54 = vld [vmem:[%s5753_s7 + $0x68] sm:$0xff]  ;;  %v1748_v1 = vld [vmem:[%s5753_s7 + $0x60] sm:$0xff]  ;;  %s5674_s20 = scalar_lea.sflag (%p5600_p0), [#allocation10], %s5832_s22 }
 0x281   : >> { %3559 = vmatmul.mubr.msk.f32.vlgmr.msra.gmra.mxu0 %vm1542_vm3, %v4867_v13  ;;  %3635 = vmatmul.mubr.msk.f32.gmra.mxu1 %vm1542_vm3, %v1534_v10  ;;  %v1751_v5 = vld [vmem:[%s5753_s7 + $0x78] sm:$0xff] }
 0x282   : >> { %3561 = vmatprep.mubr.msk.f32.mxu0 %vm1542_vm3, %v4872_v60  ;;  %3637 = vmatprep.mubr.msk.f32.mxu1 %vm1542_vm3, %v1535_v14 }
 0x283   : >> { %3646 = vmatpush3.bf16.msra.mxu1 %v3927_v59 }
 0x285   : >> { %3562 = vmatmul.mubr.msk.f32.gmra.mxu0 %vm1542_vm3, %v4895_v3  ;;  %3638 = vmatmul.mubr.msk.f32.gmra.mxu1 %vm1542_vm3, %v1536_v16 }
 0x286   : >> { %3564 = vmatprep.mubr.msk.f32.mxu0 %vm1542_vm3, %v4904_v7  ;;  %3640 = vmatprep.mubr.msk.f32.mxu1 %vm1542_vm3, %v1537_v17 }
 0x289   : >> { %3565 = vmatmul.mubr.msk.f32.gmra.mxu0 %vm1542_vm3, %v4917_v11  ;;  %3641 = vmatmul.mubr.msk.f32.gmra.mxu1 %vm1542_vm3, %v1538_v19 }
 0x28a   : >> { %3567 = vmatprep.mubr.msk.f32.mxu0 %vm1542_vm3, %v4926_v15  ;;  %3647 = vmatprep.mubr.msk.bf16.mxu1 %vm1855_vm4, %v2257_v18  ;;  %v1747_v18 = vld [vmem:[%s5753_s7 + $0x58] sm:$0xff] }
 0x28d   : >> { %3568 = vmatmul.mubr.msk.f32.gmra.mxu0 %vm1542_vm3, %v4939_v23  ;;  %3648 = vmatmul.mubr.msk.bf16.vlgmr.msra.gmra.mxu1 %vm1855_vm4, %v2258_v31 }
 0x28e   : >> { %3570 = vmatprep.mubr.msk.f32.mxu0 %vm1542_vm3, %v1531_v9  ;;  %3651 = vmatprep.mubr.msk.bf16.mxu1 %vm1855_vm4, %v2259_v33  ;;  %v1746_v9 = vld [vmem:[%s5753_s7 + $0x50] sm:$0xff] }
 0x291   : >> { %3571 = vmatmul.mubr.msk.f32.gmra.mxu0 %vm1542_vm3, %v1532_v63  ;;  %v1750_v63 = vld [vmem:[%s5753_s7 + $0x70] sm:$0xff] }
 0x292   : >> { %3573 = vmatprep.mubr.msk.f32.mxu0 %vm1542_vm3, %v1533_v6 }
 0x295   : >> { %3574 = vmatmul.mubr.msk.f32.gmra.mxu0 %vm1542_vm3, %v1534_v10  ;;  %3652 = vmatmul.mubr.msk.bf16.gmra.mxu1 %vm1855_vm4, %v2260_v20 }
 0x296   : >> { %3576 = vmatprep.mubr.msk.f32.mxu0 %vm1542_vm3, %v1535_v14  ;;  %3655 = vmatprep.mubr.msk.bf16.mxu1 %vm1855_vm4, %v2261_v21  ;;  %v1742_v21 = vld [vmem:[%s5753_s7 + $0x30] sm:$0xff] }
 0x299   : >> { %3577 = vmatmul.mubr.msk.f32.gmra.mxu0 %vm1542_vm3, %v1536_v16 }
 0x29a   : >> { %3579 = vmatprep.mubr.msk.f32.mxu0 %vm1542_vm3, %v1537_v17  ;;  %v1744_v17 = vld [vmem:[%s5753_s7 + $0x40] sm:$0xff] }
 0x29d   : >> { %3580 = vmatmul.mubr.msk.f32.gmra.mxu0 %vm1542_vm3, %v1538_v19  ;;  %3656 = vmatmul.mubr.msk.bf16.gmra.mxu1 %vm1855_vm4, %v2262_v22  ;;  %v1745_v22 = vld [vmem:[%s5753_s7 + $0x48] sm:$0xff] }
 0x29e   : >> { %3659 = vmatprep.mubr.msk.bf16.mxu1 %vm1855_vm4, %v2263_v24 }
 0x2a5   : >> { %3660 = vmatmul.mubr.msk.bf16.gmra.mxu1 %vm1855_vm4, %v2264_v41 }
 0x341   : >> { %v4984_v25 = vpop.f32.mrf.mxu0 }
 0x343   : >> { %v4986_v26 = vpop.f32.mrf.mxu0 }
 0x345   : >> { %v4988_v27 = vpop.f32.mrf.mxu0 }
 0x347   : >> { %v1667_v28 = vpop.f32.mrf.mxu0 }
 0x349   : >> { %v3566_v46 = vpop.f32.mrf.mxu0 }
 0x34b   : >> { %v1677_v50 = vpop.f32.mrf.mxu0 }
 0x34d   : >> { %v3569_v29 = vpop.f32.mrf.mxu0 }
 0x34f   : >> { %v1687_v30 = vpop.f32.mrf.mxu0 }
 0x350   : >> { %v1758_v24 = vmul.f32 %v1742_v21, %v1687_v30  ;;  %v5079_v21 = vld [vmem:[%s5759_s13] ss:$0 sm:$0xff] }
 0x351   : >> { %v3572_v32 = vpop.f32.mrf.mxu0 }
 0x352   : >> { %v1761_v41 = vmul.f32 %v3572_v32, %v1745_v22  ;;  %v1738_v32 = vld [vmem:[%s5753_s7 + $0x10] sm:$0xff] }
 0x353   : >> { %v1697_v57 = vpop.f32.mrf.mxu0 }
 0x354   : >> { %v1760_v19 = vmul.f32 %v1744_v17, %v1697_v57  ;;  %v1795_v30 = vsel %vm896_vm0, %v1761_v41, 0.0 }
 0x355   : >> { %v3575_v62 = vpop.f32.mrf.mxu0 }
 0x356   : >> { %v1763_v31 = vmul.f32 %v3575_v62, %v1747_v18  ;;  %v1740_v62 = vld [vmem:[%s5753_s7 + $0x20] sm:$0xff] }
 0x357   : >> { %v1707_v34 = vpop.f32.mrf.mxu0 }
 0x358   : >> { %v1762_v6 = vmul.f32 %v1746_v9, %v1707_v34  ;;  %v1792_v34 = vsel %vm896_vm0, %v1760_v19, 0.0  ;;  %v1801_v57 = vsel %vm896_vm0, %v1763_v31, 0.0  ;;  %v1739_v9 = vld [vmem:[%s5753_s7 + $0x18] sm:$0xff] }
 0x359   : >> { %v3578_v2 = vpop.f32.mrf.mxu0 }
 0x35a   : >> { %v1765_v56 = vmul.f32 %v3578_v2, %v1749_v54  ;;  %v1798_v33 = vsel %vm896_vm0, %v1762_v6, 0.0  ;;  %v1743_v54 = vld [vmem:[%s5753_s7 + $0x38] sm:$0xff]  ;;  %v1756_v2 = vmul.f32 %v1740_v62, %v1677_v50 }
 0x35b   : >> { %v1717_v58 = vpop.f32.mrf.mxu0 }
 0x35c   : >> { %v1764_v4 = vmul.f32 %v1748_v1, %v1717_v58  ;;  %v1807_v55 = vsel %vm896_vm0, %v1765_v56, 0.0  ;;  %v1759_v1 = vmul.f32 %v3569_v29, %v1743_v54  ;;  %v1786_v56 = vsel %vm896_vm0, %v1758_v24, 0.0  ;;  %v1741_v58 = vld [vmem:[%s5753_s7 + $0x28] sm:$0xff]  ;;  %v1736_v29 = vld [vmem:[%s5753_s7] sm:$0xff] }
 0x35d   : >> { %1808 = vadd.xlane.f32.xlu1 %v1807_v55  ;;  %v3581_v12 = vpop.f32.mrf.mxu0  ;;  %v1780_v55 = vsel %vm896_vm0, %v1756_v2, 0.0 }
 0x35e   : >> { %v1767_v61 = vmul.f32 %v3581_v12, %v1751_v5  ;;  %v1804_v14 = vsel %vm896_vm0, %v1764_v4, 0.0  ;;  %v1754_v5 = vmul.f32 %v1738_v32, %v1667_v28  ;;  %v1757_v4 = vmul.f32 %v3566_v46, %v1741_v58 }
 0x35f   : >> { %v1727_v59 = vpop.f32.mrf.mxu0  ;;  %v1789_v50 = vsel %vm896_vm0, %v1759_v1, 0.0  ;;  %v1752_v12 = vmul.f32 %v1736_v29, %v4986_v26 }
 0x360   : >> { %v1766_v10 = vmul.f32 %v1750_v63, %v1727_v59  ;;  %v1813_v16 = vsel %vm896_vm0, %v1767_v61, 0.0  ;;  %v1755_v63 = vmul.f32 %v4988_v27, %v1739_v9  ;;  %v1774_v28 = vsel %vm896_vm0, %v1754_v5, 0.0  ;;  %v1737_v61 = vld [vmem:[%s5753_s7 + $0x8] sm:$0xff] }
 0x361   : >> { %1805 = vadd.xlane.f32.xlu1 %v1804_v14  ;;  %1814 = vadd.xlane.f32.xlu0 %v1813_v16  ;;  %v1783_v46 = vsel %vm896_vm0, %v1757_v4, 0.0  ;;  %v1753_v59 = vmul.f32 %v4984_v25, %v1737_v61  ;;  %v1768_v6 = vsel %vm896_vm0, %v1752_v12, 0.0  ;;  %v5766_v27 = vmov 0.0   ;;  %v5058_v14 = vpop.f32.mrf.mxu1 }
 0x362   : >> { %v1810_v20 = vsel %vm896_vm0, %v1766_v10, 0.0  ;;  %v1777_v10 = vsel %vm896_vm0, %v1755_v63, 0.0  ;;  %3582 = vmatprep.subr.mxu0 %v5766_v27 }
 0x363   : >> { %v1771_v26 = vsel %vm896_vm0, %v1753_v59, 0.0  ;;  %v5060_v16 = vpop.f32.mrf.mxu1 }
 0x365   : >> { %1799 = vadd.xlane.f32.xlu1 %v1798_v33  ;;  %1811 = vadd.xlane.f32.xlu0 %v1810_v20  ;;  %v5062_v17 = vpop.f32.mrf.mxu1 }
 0x367   : >> { %v5066_v25 = vpop.f32.mrf.mxu1 }
 0x369   : >> { %1793 = vadd.xlane.f32.xlu1 %v1792_v34  ;;  %1802 = vadd.xlane.f32.xlu0 %v1801_v57  ;;  %v5081_v22 = vpop.f32.mrf.mxu1 }
 0x36b   : >> { %v5092_v2 = vpop.f32.mrf.mxu1 }
 0x36d   : >> { %1787 = vadd.xlane.f32.xlu1 %v1786_v56  ;;  %1796 = vadd.xlane.f32.xlu0 %v1795_v30  ;;  %v5104_v4 = vpop.f32.mrf.mxu1 }
 0x36f   : >> { %v5118_v61 = vpop.f32.mrf.mxu1 }
 0x371   : >> { %1781 = vadd.xlane.f32.xlu1 %v1780_v55  ;;  %1790 = vadd.xlane.f32.xlu0 %v1789_v50 }
 0x375   : >> { %1775 = vadd.xlane.f32.xlu1 %v1774_v28  ;;  %1784 = vadd.xlane.f32.xlu0 %v1783_v46 }
 0x379   : >> { %1769 = vadd.xlane.f32.xlu1 %v1768_v6  ;;  %1778 = vadd.xlane.f32.xlu0 %v1777_v10 }
 0x37d   : >> { %1772 = vadd.xlane.f32.xlu0 %v1771_v26 }
 0x3e6   : >> { %v5064_v18 = vpop.xlane.xlu1 %1808 }
 0x3e7   : >> { %v1829_v20 = vmul.f32 %v4168_v51, %v5064_v18 }
 0x3e9   : >> { %v1852_v54 = vmul.f32 %v5079_v21, %v1829_v20 }
 0x3ea   : >> { %v5068_v19 = vpop.xlane.xlu1 %1805  ;;  %v5070_v31 = vpop.xlane.xlu0 %1814 }
 0x3eb   : >> { %v1831_v33 = vmul.f32 %v4160_v53, %v5070_v31  ;;  %v1828_v1 = vmul.f32 %v4172_v49, %v5068_v19  ;;  %v1895_v5 = vsel %vm1855_vm4, %v1852_v54, 0.0 }
 0x3ed   : >> { %v1854_v24 = vmul.f32 %v5079_v21, %v1831_v33  ;;  %v1851_v29 = vmul.f32 %v5079_v21, %v1828_v1 }
 0x3ee   : >> { %v5084_v41 = vpop.xlane.xlu1 %1799  ;;  %v5086_v34 = vpop.xlane.xlu0 %1811 }
 0x3ef   : >> { %v1830_v57 = vmul.f32 %v4164_v52, %v5086_v34  ;;  %v1901_v62 = vsel %vm1855_vm4, %v1854_v24, 0.0  ;;  %v1826_v55 = vmul.f32 %v4180_v47, %v5084_v41  ;;  %v1892_v6 = vsel %vm1855_vm4, %v1851_v29, 0.0 }
 0x3f0   : >> { %1902 = vadd.xlane.f32.xlu0 %v1901_v62  ;;  %v3649_v62 = vpop.f32.mrf.mxu1 }
 0x3f1   : >> { %v1853_v32 = vmul.f32 %v5079_v21, %v1830_v57  ;;  %v1849_v10 = vmul.f32 %v5079_v21, %v1826_v55 }
 0x3f2   : >> { %v5096_v56 = vpop.xlane.xlu1 %1793  ;;  %v5098_v30 = vpop.xlane.xlu0 %1802 }
 0x3f3   : >> { %v1827_v58 = vmul.f32 %v4176_v48, %v5098_v30  ;;  %v1898_v50 = vsel %vm1855_vm4, %v1853_v32, 0.0  ;;  %v1824_v59 = vmul.f32 %v4188_v44, %v5096_v56  ;;  %v1886_v1 = vsel %vm1855_vm4, %v1849_v10, 0.0 }
 0x3f4   : >> { %1896 = vadd.xlane.f32.xlu0 %v1895_v5  ;;  %1899 = vadd.xlane.f32.xlu1 %v1898_v50 }
 0x3f5   : >> { %v1850_v63 = vmul.f32 %v5079_v21, %v1827_v58  ;;  %v1847_v32 = vmul.f32 %v5079_v21, %v1824_v59 }
 0x3f6   : >> { %v5110_v9 = vpop.xlane.xlu1 %1787  ;;  %v5112_v12 = vpop.xlane.xlu0 %1796 }
 0x3f7   : >> { %v1825_v28 = vmul.f32 %v4184_v45, %v5112_v12  ;;  %v1889_v46 = vsel %vm1855_vm4, %v1850_v63, 0.0  ;;  %v1822_v54 = vmul.f32 %v4196_v42, %v5110_v9  ;;  %v2346_v63 = vpop.f32.mrf.mxu1 }
 0x3f8   : >> { %1890 = vadd.xlane.f32.xlu0 %v1889_v46  ;;  %1893 = vadd.xlane.f32.xlu1 %v1892_v6  ;;  %v1880_v46 = vsel %vm1855_vm4, %v1847_v32, 0.0 }
 0x3f9   : >> { %v1848_v26 = vmul.f32 %v5079_v21, %v1825_v28  ;;  %v1845_v59 = vmul.f32 %v5079_v21, %v1822_v54 }
 0x3fa   : >> { %v5125_v33 = vpop.xlane.xlu1 %1781  ;;  %v5127_v20 = vpop.xlane.xlu0 %1790 }
 0x3fb   : >> { %v1823_v24 = vmul.f32 %v4192_v43, %v5127_v20  ;;  %v1883_v57 = vsel %vm1855_vm4, %v1848_v26, 0.0  ;;  %v1820_v28 = vmul.f32 %v4204_v39, %v5125_v33 }
 0x3fc   : >> { %1884 = vadd.xlane.f32.xlu0 %v1883_v57  ;;  %1887 = vadd.xlane.f32.xlu1 %v1886_v1  ;;  %v3650_v57 = vpop.f32.mrf.mxu1 }
 0x3fd   : >> { %v1846_v58 = vmul.f32 %v5079_v21, %v1823_v24  ;;  %v1843_v32 = vmul.f32 %v5079_v21, %v1820_v28 }
 0x3fe   : >> { %v5137_v5 = vpop.xlane.xlu0 %1784  ;;  %v5142_v29 = vpop.xlane.xlu1 %1775 }
 0x3ff   : >> { %v1821_v55 = vmul.f32 %v4200_v40, %v5137_v5  ;;  %v1877_v50 = vsel %vm1855_vm4, %v1846_v58, 0.0  ;;  %v1818_v1 = vmul.f32 %v4212_v37, %v5142_v29  ;;  %v1874_v58 = vsel %vm1855_vm4, %v1845_v59, 0.0 }
 0x400   : >> { %1878 = vadd.xlane.f32.xlu0 %v1877_v50  ;;  %1881 = vadd.xlane.f32.xlu1 %v1880_v46  ;;  %v1868_v59 = vsel %vm1855_vm4, %v1843_v32, 0.0 }
 0x401   : >> { %v1844_v6 = vmul.f32 %v5079_v21, %v1821_v55  ;;  %v1841_v28 = vmul.f32 %v5079_v21, %v1818_v1  ;;  %v5803_v1 = vmov 0.0  }
 0x402   : >> { %v5149_v10 = vpop.xlane.xlu0 %1778  ;;  %v5159_v55 = vpop.xlane.xlu1 %1769  ;;  %3614 = vmatprep.mubr.msk.f32.mxu0 %vm4227_vm5, %v5803_v1 }
 0x403   : >> { %v1819_v26 = vmul.f32 %v4208_v38, %v5149_v10  ;;  %v1871_v24 = vsel %vm1855_vm4, %v1844_v6, 0.0  ;;  %v1816_v27 = vmul.f32 %v4220_v35, %v5159_v55  ;;  %v1862_v53 = vsel %vm1855_vm4, %v1841_v28, 0.0 }
 0x404   : >> { %1872 = vadd.xlane.f32.xlu0 %v1871_v24  ;;  %1875 = vadd.xlane.f32.xlu1 %v1874_v58  ;;  %v2349_v24 = vpop.f32.mrf.mxu1 }
 0x405   : >> { %v1842_v54 = vmul.f32 %v5079_v21, %v1819_v26  ;;  %v1839_v52 = vmul.f32 %v5079_v21, %v1816_v27 }
 0x406   : >> { %v5161_v50 = vpop.xlane.xlu0 %1772 }
 0x407   : >> { %v1817_v46 = vmul.f32 %v4216_v36, %v5161_v50  ;;  %v1865_v6 = vsel %vm1855_vm4, %v1842_v54, 0.0  ;;  %v3653_v54 = vpop.f32.mrf.mxu1  ;;  %v1856_v49 = vsel %vm1855_vm4, %v1839_v52, 0.0 }
 0x408   : >> { %1866 = vadd.xlane.f32.xlu0 %v1865_v6  ;;  %1869 = vadd.xlane.f32.xlu1 %v1868_v59 }
 0x409   : >> { %v1840_v26 = vmul.f32 %v5079_v21, %v1817_v46  ;;  %v2362_v51 = vpop.f32.mrf.mxu1  ;;  %v3375_v46 = vld [vmem:[%s5757_s11] ss:$0 sm:$0xff] }
 0x40a   : >> { %v5179_v28 = vadd.f32 %v3375_v46, %v2346_v63  ;;  %v5185_v52 = vadd.f32 %v3375_v46, %v2362_v51  ;;  %v5191_v21 = vadd.f32 %v3650_v57, %v3375_v46 }
 0x40b   : >> { %v1859_v58 = vsel %vm1855_vm4, %v1840_v26, 0.0  ;;  %v3654_v32 = vpop.f32.mrf.mxu1  ;;  %v5181_v26 = vadd.f32 %v3375_v46, %v2349_v24 }
 0x40c   : >> { %1860 = vadd.xlane.f32.xlu0 %v1859_v58  ;;  %1863 = vadd.xlane.f32.xlu1 %v1862_v53  ;;  %v5183_v53 = vadd.f32 %v3649_v62, %v3375_v46  ;;  %v5193_v58 = vadd.f32 %v3653_v54, %v3375_v46  ;;  %v5205_v24 = vadd.f32 %v3654_v32, %v3375_v46 }
 0x40d   : >> { %v2365_v6 = vpop.f32.mrf.mxu1 }
 0x40e   : >> { %v5199_v62 = vadd.f32 %v3375_v46, %v2365_v6 }
 0x40f   : >> { %v3657_v59 = vpop.f32.mrf.mxu1 }
 0x410   : >> { %1857 = vadd.xlane.f32.xlu1 %v1856_v49  ;;  %v2387_v54 = vadd.f32 %v3657_v59, %v3375_v46 }
 0x411   : >> { %v2378_v27 = vpop.f32.mrf.mxu1 }
 0x412   : >> { %v2379_v63 = vadd.f32 %v3375_v46, %v2378_v27 }
 0x413   : >> { %v3658_v49 = vpop.f32.mrf.mxu1 }
 0x414   : >> { %v2390_v32 = vadd.f32 %v3658_v49, %v3375_v46  ;;  %v5230_v49 = vld [vmem:[%s5755_s9] ss:$0 sm:$0xff] }
 0x415   : >> { %v2381_v51 = vpop.f32.mrf.mxu1 }
 0x416   : >> { %v2382_v6 = vadd.f32 %v3375_v46, %v2381_v51  ;;  %v2228_v51 = vmul.f32 %v5066_v25, %v5084_v41 }
 0x417   : >> { %v3661_v57 = vpop.f32.mrf.mxu1 }
 0x418   : >> { %v5215_v27 = vadd.f32 %v3661_v57, %v3375_v46 }
 0x419   : >> { %v2394_v47 = vpop.f32.mrf.mxu1 }
 0x41a   : >> { %v2395_v48 = vadd.f32 %v3375_v46, %v2394_v47  ;;  %v2226_v47 = vmul.f32 %v5060_v16, %v5096_v56  ;;  %v5241_v16 = vadd.f32 %v5230_v49, %v2228_v51 }
 0x41b   : >> { %v3662_v44 = vpop.f32.mrf.mxu1 }
 0x41c   : >> { %v5221_v42 = vadd.f32 %v3662_v44, %v3375_v46  ;;  %v2230_v44 = vmul.f32 %v5092_v2, %v5068_v19  ;;  %v2419_v41 = vadd.f32 %v2387_v54, %v5241_v16 }
 0x41d   : >> { %v2397_v45 = vpop.f32.mrf.mxu1 }
 0x41e   : >> { %v2398_v59 = vadd.f32 %v3375_v46, %v2397_v45  ;;  %v5235_v45 = vadd.f32 %v5230_v49, %v2226_v47  ;;  %v5245_v25 = vadd.f32 %v5230_v49, %v2230_v44 }
 0x420   : >> { %v2417_v56 = vadd.f32 %v2379_v63, %v5235_v45 }
 0x421   : >> { %2539 = vrot.lane.b32.xlu1 %v5181_v26, %s4228_s21 }
 0x422   : >> { %2537 = vrot.lane.b32.xlu0 %v5179_v28, %s4228_s21  ;;  %v3394_v47 = vmul.f32 -1.442695, %v2417_v56 }
 0x424   : >> { %3928 = vpow2.f32 %v3394_v47 }
 0x425   : >> { %2541 = vrot.lane.b32.xlu1 %v5183_v53, %s4228_s21 }
 0x426   : >> { %2545 = vrot.lane.b32.xlu0 %v5185_v52, %s4228_s21 }
 0x429   : >> { %2543 = vrot.lane.b32.xlu1 %v5191_v21, %s4228_s21 }
 0x42a   : >> { %2549 = vrot.lane.b32.xlu0 %v5193_v58, %s4228_s21 }
 0x42d   : >> { %2547 = vrot.lane.b32.xlu1 %v5199_v62, %s4228_s21 }
 0x42e   : >> { %2553 = vrot.lane.b32.xlu0 %v2379_v63, %s4228_s21  ;;  %v2421_v63 = vadd.f32 %v2395_v48, %v5245_v25 }
 0x430   : >> { %v3398_v44 = vmul.f32 -1.442695, %v2421_v63 }
 0x431   : >> { %2551 = vrot.lane.b32.xlu1 %v5205_v24, %s4228_s21 }
 0x432   : >> { %2557 = vrot.lane.b32.xlu0 %v2387_v54, %s4228_s21  ;;  %v2229_v54 = vmul.f32 %v5062_v17, %v5098_v30 }
 0x434   : >> { %v5264_v56 = vadd.f32 %v5230_v49, %v2229_v54 }
 0x435   : >> { %2555 = vrot.lane.b32.xlu1 %v2382_v6, %s4228_s21 }
 0x436   : >> { %2561 = vrot.lane.b32.xlu0 %v2395_v48, %s4228_s21  ;;  %v2231_v48 = vmul.f32 %v5081_v22, %v5064_v18  ;;  %v2420_v47 = vadd.f32 %v2390_v32, %v5264_v56 }
 0x439   : >> { %2559 = vrot.lane.b32.xlu1 %v2390_v32, %s4228_s21 }
 0x43a   : >> { %2565 = vrot.lane.b32.xlu0 %v5215_v27, %s4228_s21 }
 0x43d   : >> { %2563 = vrot.lane.b32.xlu1 %v2398_v59, %s4228_s21 }
 0x441   : >> { %2567 = vrot.lane.b32.xlu1 %v5221_v42, %s4228_s21 }
 0x479   : >> { %v1903_v57 = vpop.xlane.xlu0 %1902 }
 0x47a   : >> { %3583 = vmatpush3.msra.mxu0 %v1903_v57  ;;  %v2227_v57 = vmul.f32 %v5058_v14, %v5112_v12 }
 0x47b   : >> { %3584 = vmatprep.subr.mxu0 %v5803_v1 }
 0x47c   : >> { %v5257_v51 = vadd.f32 %v5230_v49, %v2227_v57 }
 0x47d   : >> { %v1897_v46 = vpop.xlane.xlu0 %1896  ;;  %v1900_v43 = vpop.xlane.xlu1 %1899 }
 0x47e   : >> { %3585 = vmatpush3.msra.mxu0 %v1900_v43  ;;  %v3396_v43 = vmul.f32 -1.442695, %v2419_v41  ;;  %v2418_v17 = vadd.f32 %v2382_v6, %v5257_v51  ;;  %v5270_v41 = vadd.f32 %v5230_v49, %v2231_v48  ;;  %v3929_v6 = vpop.eup %3928 }
 0x47f   : >> { %3586 = vmatprep.subr.mxu0 %v5803_v1  ;;  %v2481_v32 = vadd.f32 1.0, %v3929_v6 }
 0x480   : >> { %3587 = vmatpush3.msra.mxu0 %v1897_v46  ;;  %3930 = vpow2.f32 %v3396_v43  ;;  %v3395_v18 = vmul.f32 -1.442695, %v2418_v17 }
 0x481   : >> { %v1891_v19 = vpop.xlane.xlu0 %1890  ;;  %v1894_v2 = vpop.xlane.xlu1 %1893  ;;  %3588 = vmatprep.subr.mxu0 %v5803_v1  ;;  %3932 = vpow2.f32 %v3398_v44 }
 0x482   : >> { %3589 = vmatpush3.msra.mxu0 %v1894_v2  ;;  %v3397_v2 = vmul.f32 -1.442695, %v2420_v47  ;;  %3934 = vpow2.f32 %v3395_v18 }
 0x483   : >> { %3590 = vmatprep.subr.mxu0 %v5803_v1 }
 0x484   : >> { %3591 = vmatpush3.msra.mxu0 %v1891_v19  ;;  %v2422_v19 = vadd.f32 %v2398_v59, %v5270_v41  ;;  %3936 = vpow2.f32 %v3397_v2 }
 0x485   : >> { %v1885_v14 = vpop.xlane.xlu0 %1884  ;;  %v1888_v12 = vpop.xlane.xlu1 %1887  ;;  %3592 = vmatprep.subr.mxu0 %v5803_v1  ;;  %3938 = vrcp.f32 %v2481_v32 }
 0x486   : >> { %3593 = vmatpush3.msra.mxu0 %v1888_v12 }
 0x487   : >> { %3594 = vmatprep.subr.mxu0 %v5803_v1 }
 0x488   : >> { %3595 = vmatpush3.msra.mxu0 %v1885_v14  ;;  %v3399_v14 = vmul.f32 -1.442695, %v2422_v19 }
 0x489   : >> { %v1879_v30 = vpop.xlane.xlu0 %1878  ;;  %v1882_v46 = vpop.xlane.xlu1 %1881  ;;  %3596 = vmatprep.subr.mxu0 %v5803_v1 }
 0x48a   : >> { %3597 = vmatpush3.msra.mxu0 %v1882_v46  ;;  %3940 = vpow2.f32 %v3399_v14 }
 0x48b   : >> { %3598 = vmatprep.subr.mxu0 %v5803_v1 }
 0x48c   : >> { %3599 = vmatpush3.msra.mxu0 %v1879_v30  ;;  %v1904_v30 = vld [vmem:[%s5752_s6] sm:$0xff] }
 0x48d   : >> { %v1873_v22 = vpop.xlane.xlu0 %1872  ;;  %v1876_v57 = vpop.xlane.xlu1 %1875  ;;  %3600 = vmatprep.subr.mxu0 %v5803_v1 }
 0x48e   : >> { %3601 = vmatpush3.msra.mxu0 %v1876_v57  ;;  %v3931_v54 = vpop.eup %3930 }
 0x48f   : >> { %3602 = vmatprep.subr.mxu0 %v5803_v1  ;;  %v2483_v59 = vadd.f32 1.0, %v3931_v54  ;;  %v3933_v48 = vpop.eup %3932 }
 0x490   : >> { %3603 = vmatpush3.msra.mxu0 %v1873_v22  ;;  %v2485_v47 = vadd.f32 1.0, %v3933_v48  ;;  %v3935_v22 = vpop.eup %3934 }
 0x491   : >> { %v1867_v63 = vpop.xlane.xlu0 %1866  ;;  %v1870_v43 = vpop.xlane.xlu1 %1869  ;;  %3604 = vmatprep.subr.mxu0 %v5803_v1  ;;  %3942 = vrcp.f32 %v2483_v59 }
 0x492   : >> { %3605 = vmatpush3.msra.mxu0 %v1870_v43  ;;  %3944 = vrcp.f32 %v2485_v47  ;;  %v3937_v19 = vpop.eup %3936 }
 0x493   : >> { %3606 = vmatprep.subr.mxu0 %v5803_v1  ;;  %v2484_v2 = vadd.f32 1.0, %v3937_v19 }
 0x494   : >> { %3607 = vmatpush3.msra.mxu0 %v1867_v63 }
 0x495   : >> { %v1861_v12 = vpop.xlane.xlu0 %1860  ;;  %v1864_v44 = vpop.xlane.xlu1 %1863  ;;  %3608 = vmatprep.subr.mxu0 %v5803_v1 }
 0x496   : >> { %3609 = vmatpush3.msra.mxu0 %v1864_v44 }
 0x497   : >> { %3610 = vmatprep.subr.mxu0 %v5803_v1 }
 0x498   : >> { %3611 = vmatpush3.msra.mxu0 %v1861_v12 }
 0x499   : >> { %v5280_v17 = vpop.permute.xlu0 %2537  ;;  %v1858_v46 = vpop.xlane.xlu1 %1857  ;;  %3612 = vmatprep.subr.mxu0 %v5803_v1  ;;  %v2482_v1 = vadd.f32 1.0, %v3935_v22 }
 0x49a   : >> { %3613 = vmatpush3.msra.mxu0 %v1858_v46 }
 0x49b   : >> { %3615 = vmatmul.mubr.f32.vlgmr.msra.gmra.mxu0 %v1904_v30  ;;  %3617 = vmatprep.subr.mxu0 %v4878_v0  ;;  %3946 = vrcp.f32 %v2482_v1 }
 0x49c   : >> { %3618 = vmatpush3.msra.mxu0 %v4878_v0  ;;  %3619 = vmatprep.mubr.msk.f32.mxu0 %vm1542_vm3, %v4852_v8  ;;  %v5304_v8 = vpop.eup %3938  ;;  %3948 = vrcp.f32 %v2484_v2 }
 0x49d   : >> { %v5288_v18 = vpop.permute.xlu0 %2545  ;;  %v5292_v57 = vpop.permute.xlu1 %2539 }
 0x49f   : >> { %3620 = vmatmul.mubr.msk.f32.vlgmr.msra.gmra.mxu0 %vm1542_vm3, %v4867_v13  ;;  %v3941_v13 = vpop.eup %3940 }
 0x4a0   : >> { %3622 = vmatprep.mubr.msk.f32.mxu0 %vm1542_vm3, %v4872_v60  ;;  %v5314_v60 = vpop.eup %3942 }
 0x4a1   : >> { %v5296_v6 = vpop.permute.xlu0 %2549  ;;  %v5300_v0 = vpop.permute.xlu1 %2541 }
 0x4a3   : >> { %3623 = vmatmul.mubr.msk.f32.gmra.mxu0 %vm1542_vm3, %v4895_v3  ;;  %v2486_v3 = vadd.f32 1.0, %v3941_v13 }
 0x4a4   : >> { %3625 = vmatprep.mubr.msk.f32.mxu0 %vm1542_vm3, %v4904_v7 }
 0x4a5   : >> { %v2554_v63 = vpop.permute.xlu0 %2553  ;;  %v5308_v43 = vpop.permute.xlu1 %2543  ;;  %3950 = vrcp.f32 %v2486_v3 }
 0x4a6   : >> { %v2593_v32 = vmul.f32 %v5304_v8, %v2554_v63 }
 0x4a7   : >> { %3626 = vmatmul.mubr.msk.f32.gmra.mxu0 %vm1542_vm3, %v4917_v11  ;;  %v5324_v11 = vpop.eup %3944 }
 0x4a8   : >> { %2633 = vrot.lane.b32.xlu0 %v2593_v32, %s4228_s21  ;;  %3628 = vmatprep.mubr.msk.f32.mxu0 %vm1542_vm3, %v4926_v15  ;;  %v5330_v15 = vpop.eup %3946 }
 0x4a9   : >> { %v2558_v54 = vpop.permute.xlu0 %2557  ;;  %v5318_v14 = vpop.permute.xlu1 %2547 }
 0x4aa   : >> { %v2595_v7 = vmul.f32 %v5314_v60, %v2558_v54 }
 0x4ab   : >> { %3629 = vmatmul.mubr.msk.f32.gmra.mxu0 %vm1542_vm3, %v4939_v23  ;;  %v5334_v23 = vpop.eup %3948 }
 0x4ac   : >> { %2637 = vrot.lane.b32.xlu0 %v2595_v7, %s4228_s21 }
 0x4ad   : >> { %v2562_v12 = vpop.permute.xlu0 %2561  ;;  %v5326_v44 = vpop.permute.xlu1 %2551 }
 0x4ae   : >> { %v2597_v59 = vmul.f32 %v5324_v11, %v2562_v12  ;;  %v2233_v12 = vmul.f32 %v5104_v4, %v5070_v31 }
 0x4b0   : >> { %2641 = vrot.lane.b32.xlu0 %v2597_v59, %s4228_s21  ;;  %v5366_v4 = vadd.f32 %v5230_v49, %v2233_v12 }
 0x4b1   : >> { %v2556_v48 = vpop.permute.xlu1 %2555 }
 0x4b2   : >> { %v2594_v30 = vmul.f32 %v5330_v15, %v2556_v48  ;;  %v5338_v22 = vpop.eup %3950 }
 0x4b4   : >> { %2635 = vrot.lane.b32.xlu1 %v2594_v30, %s4228_s21 }
 0x4b5   : >> { %v2560_v46 = vpop.permute.xlu1 %2559 }
 0x4b6   : >> { %v2596_v47 = vmul.f32 %v5334_v23, %v2560_v46 }
 0x4b8   : >> { %2639 = vrot.lane.b32.xlu1 %v2596_v47, %s4228_s21 }
 0x4b9   : >> { %v2564_v1 = vpop.permute.xlu1 %2563 }
 0x4ba   : >> { %v2598_v19 = vmul.f32 %v5338_v22, %v2564_v1 }
 0x4bc   : >> { %2643 = vrot.lane.b32.xlu1 %v2598_v19, %s4228_s21 }
 0x55b   : >> { %v5342_v2 = vpop.f32.mrf.mxu0 }
 0x55d   : >> { %v3616_v63 = vpop.f32.mrf.mxu0 }
 0x55f   : >> { %v3621_v13 = vpop.f32.mrf.mxu0 }
 0x560   : >> { %v2219_v32 = vmul.f32 %v3621_v13, %v5161_v50  ;;  %v2232_v50 = vmul.f32 %v5118_v61, %v5086_v34 }
 0x561   : >> { %v2139_v3 = vpop.f32.mrf.mxu0 }
 0x562   : >> { %v5346_v54 = vadd.f32 %v5230_v49, %v2219_v32  ;;  %v2218_v7 = vmul.f32 %v2139_v3, %v5159_v55  ;;  %v5374_v61 = vadd.f32 %v5230_v49, %v2232_v50 }
 0x563   : >> { %v3624_v59 = vpop.f32.mrf.mxu0 }
 0x564   : >> { %v2410_v48 = vadd.f32 %v5181_v26, %v5346_v54  ;;  %v5354_v30 = vadd.f32 %v5230_v49, %v2218_v7  ;;  %v2221_v46 = vmul.f32 %v3624_v59, %v5149_v10  ;;  %v2424_v7 = vadd.f32 %v5221_v42, %v5366_v4 }
 0x565   : >> { %v2149_v47 = vpop.f32.mrf.mxu0 }
 0x566   : >> { %v3387_v1 = vmul.f32 -1.442695, %v2410_v48  ;;  %v2409_v55 = vadd.f32 %v5179_v28, %v5354_v30  ;;  %v5362_v19 = vadd.f32 %v5230_v49, %v2221_v46  ;;  %v2220_v31 = vmul.f32 %v2149_v47, %v5142_v29 }
 0x567   : >> { %v3627_v26 = vpop.f32.mrf.mxu0  ;;  %v2423_v46 = vadd.f32 %v5215_v27, %v5374_v61 }
 0x568   : >> { %3952 = vpow2.f32 %v3387_v1  ;;  %v3386_v63 = vmul.f32 -1.442695, %v2409_v55  ;;  %v2412_v10 = vadd.f32 %v5191_v21, %v5362_v19  ;;  %v5371_v34 = vadd.f32 %v5230_v49, %v2220_v31 }
 0x569   : >> { %v2223_v28 = vmul.f32 %v3627_v26, %v5137_v5  ;;  %v2159_v13 = vpop.f32.mrf.mxu0  ;;  %v3401_v1 = vmul.f32 -1.442695, %v2424_v7 }
 0x56a   : >> { %3954 = vpow2.f32 %v3386_v63  ;;  %v3389_v29 = vmul.f32 -1.442695, %v2412_v10  ;;  %v2411_v32 = vadd.f32 %v5183_v53, %v5371_v34  ;;  %v2222_v3 = vmul.f32 %v2159_v13, %v5125_v33 }
 0x56b   : >> { %v5383_v21 = vadd.f32 %v5230_v49, %v2223_v28  ;;  %v3630_v12 = vpop.f32.mrf.mxu0 }
 0x56c   : >> { %3956 = vpow2.f32 %v3389_v29  ;;  %v3388_v59 = vmul.f32 -1.442695, %v2411_v32  ;;  %v5386_v48 = vadd.f32 %v5230_v49, %v2222_v3  ;;  %v2225_v5 = vmul.f32 %v3630_v12, %v5127_v20 }
 0x56d   : >> { %v2414_v33 = vadd.f32 %v5199_v62, %v5383_v21  ;;  %v2169_v53 = vpop.f32.mrf.mxu0  ;;  %v3400_v62 = vmul.f32 -1.442695, %v2423_v46 }
 0x56e   : >> { %3958 = vpow2.f32 %v3388_v59  ;;  %v2413_v42 = vadd.f32 %v5185_v52, %v5386_v48  ;;  %v5396_v50 = vadd.f32 %v5230_v49, %v2225_v5  ;;  %v2224_v47 = vmul.f32 %v2169_v53, %v5110_v9  ;;  %v2568_v59 = vpop.permute.xlu1 %2567 }
 0x56f   : >> { %v3391_v55 = vmul.f32 -1.442695, %v2414_v33  ;;  %v2566_v33 = vpop.permute.xlu0 %2565 }
 0x570   : >> { %v3390_v31 = vmul.f32 -1.442695, %v2413_v42  ;;  %v2416_v20 = vadd.f32 %v5205_v24, %v5396_v50  ;;  %v5402_v27 = vadd.f32 %v5230_v49, %v2224_v47 }
 0x571   : >> { %3960 = vpow2.f32 %v3391_v55 }
 0x572   : >> { %3962 = vpow2.f32 %v3390_v31  ;;  %v3393_v26 = vmul.f32 -1.442695, %v2416_v20  ;;  %v2415_v52 = vadd.f32 %v5193_v58, %v5402_v27 }
 0x573   : >> { %3964 = vpow2.f32 %v3401_v1  ;;  %v2636_v1 = vpop.permute.xlu1 %2635 }
 0x574   : >> { %3966 = vpow2.f32 %v3393_v26  ;;  %v3392_v63 = vmul.f32 -1.442695, %v2415_v52 }
 0x575   : >> { %v3953_v9 = vpop.eup %3952  ;;  %3968 = vpow2.f32 %v3400_v62  ;;  %v2634_v62 = vpop.permute.xlu0 %2633 }
 0x576   : >> { %v2474_v10 = vadd.f32 1.0, %v3953_v9  ;;  %3970 = vpow2.f32 %v3392_v63 }
 0x577   : >> { %v3955_v28 = vpop.eup %3954 }
 0x578   : >> { %3972 = vrcp.f32 %v2474_v10  ;;  %v2473_v24 = vadd.f32 1.0, %v3955_v28  ;;  %v2640_v28 = vpop.permute.xlu1 %2639 }
 0x579   : >> { %v3957_v13 = vpop.eup %3956 }
 0x57a   : >> { %3974 = vrcp.f32 %v2473_v24  ;;  %v2476_v49 = vadd.f32 1.0, %v3957_v13 }
 0x57b   : >> { %v3959_v29 = vpop.eup %3958 }
 0x57c   : >> { %3976 = vrcp.f32 %v2476_v49  ;;  %v2475_v32 = vadd.f32 1.0, %v3959_v29  ;;  %v2674_v49 = vadd.f32 %v2636_v1, %v5257_v51  ;;  %v2673_v29 = vadd.f32 %v2634_v62, %v5235_v45  ;;  %v2644_v51 = vpop.permute.xlu1 %2643 }
 0x57e   : >> { %v3961_v3 = vpop.eup %3960  ;;  %3978 = vrcp.f32 %v2475_v32 }
 0x57f   : >> { %v3963_v7 = vpop.eup %3962  ;;  %v2478_v58 = vadd.f32 1.0, %v3961_v3 }
 0x580   : >> { %v3965_v12 = vpop.eup %3964  ;;  %v2477_v5 = vadd.f32 1.0, %v3963_v7 }
 0x581   : >> { %v3967_v46 = vpop.eup %3966  ;;  %3980 = vrcp.f32 %v2478_v58  ;;  %v2488_v20 = vadd.f32 1.0, %v3965_v12 }
 0x582   : >> { %v3969_v53 = vpop.eup %3968  ;;  %3982 = vrcp.f32 %v2477_v5  ;;  %v2480_v42 = vadd.f32 1.0, %v3967_v46 }
 0x583   : >> { %v3971_v47 = vpop.eup %3970  ;;  %v2487_v26 = vadd.f32 1.0, %v3969_v53 }
 0x584   : >> { %3984 = vrcp.f32 %v2480_v42  ;;  %v2479_v55 = vadd.f32 1.0, %v3971_v47 }
 0x585   : >> { %v5406_v31 = vpop.eup %3972 }
 0x586   : >> { %3986 = vrcp.f32 %v2479_v55  ;;  %v2586_v52 = vmul.f32 %v5406_v31, %v5292_v57  ;;  %v2638_v57 = vpop.permute.xlu0 %2637 }
 0x587   : >> { %v5410_v63 = vpop.eup %3974  ;;  %3988 = vrcp.f32 %v2488_v20  ;;  %v2675_v45 = vadd.f32 %v2638_v57, %v5241_v16 }
 0x588   : >> { %2619 = vrot.lane.b32.xlu1 %v2586_v52, %s4228_s21  ;;  %v2585_v9 = vmul.f32 %v5410_v63, %v5280_v17  ;;  %3990 = vrcp.f32 %v2487_v26 }
 0x589   : >> { %v5415_v10 = vpop.eup %3976  ;;  %3992 = vtanh.f32 %v2674_v49 }
 0x58a   : >> { %2617 = vrot.lane.b32.xlu0 %v2585_v9, %s4228_s21  ;;  %v2588_v24 = vmul.f32 %v5415_v10, %v5308_v43  ;;  %v2676_v43 = vadd.f32 %v2640_v28, %v5264_v56  ;;  %3994 = vtanh.f32 %v2673_v29  ;;  %v2642_v12 = vpop.permute.xlu0 %2641 }
 0x58b   : >> { %v5420_v13 = vpop.eup %3978  ;;  %v2677_v16 = vadd.f32 %v2642_v12, %v5245_v25  ;;  %v5812_v12 = vld [vmem:[#allocation15_spill] sm:$0xff] }
 0x58c   : >> { %2623 = vrot.lane.b32.xlu1 %v2588_v24, %s4228_s21  ;;  %v2587_v17 = vmul.f32 %v5420_v13, %v5300_v0  ;;  %3996 = vtanh.f32 %v2676_v43 }
 0x58d   : >> { %3998 = vtanh.f32 %v2675_v45  ;;  %v5809_v45 = vld [vmem:[#allocation19_spill] sm:$0xff] }
 0x58e   : >> { %v5427_v32 = vpop.eup %3980  ;;  %2621 = vrot.lane.b32.xlu0 %v2587_v17, %s4228_s21 }
 0x58f   : >> { %v5430_v3 = vpop.eup %3982  ;;  %v2590_v7 = vmul.f32 %v5427_v32, %v5318_v14  ;;  %v2678_v14 = vadd.f32 %v2644_v51, %v5270_v41  ;;  %v5810_v51 = vld [vmem:[#allocation16_spill] sm:$0xff] }
 0x590   : >> { %v2589_v58 = vmul.f32 %v5430_v3, %v5288_v18 }
 0x591   : >> { %v5438_v0 = vpop.eup %3984  ;;  %2627 = vrot.lane.b32.xlu1 %v2590_v7, %s4228_s21  ;;  %4000 = vtanh.f32 %v2678_v14  ;;  %v5808_v7 = vld [vmem:[#allocation18_spill] sm:$0xff] }
 0x592   : >> { %2625 = vrot.lane.b32.xlu0 %v2589_v58, %s4228_s21  ;;  %v2592_v56 = vmul.f32 %v5438_v0, %v5326_v44  ;;  %4002 = vtanh.f32 %v2677_v16 }
 0x593   : >> { %v5444_v5 = vpop.eup %3986 }
 0x594   : >> { %v2591_v18 = vmul.f32 %v5444_v5, %v5296_v6  ;;  %v5451_v46 = vpop.eup %3988 }
 0x595   : >> { %2631 = vrot.lane.b32.xlu1 %v2592_v56, %s4228_s21  ;;  %v5454_v53 = vpop.eup %3990  ;;  %v2600_v44 = vmul.f32 %v5451_v46, %v2568_v59 }
 0x596   : >> { %2629 = vrot.lane.b32.xlu0 %v2591_v18, %s4228_s21  ;;  %v2599_v42 = vmul.f32 %v5454_v53, %v2566_v33  ;;  %v3993_v25 = vpop.eup %3992 }
 0x597   : >> { %v3995_v41 = vpop.eup %3994 }
 0x599   : >> { %2647 = vrot.lane.b32.xlu1 %v2600_v44, %s4228_s21  ;;  %v3997_v6 = vpop.eup %3996  ;;  %v5813_v44 = vld [vmem:[#allocation14_spill] sm:$0xff] }
 0x59a   : >> { %2645 = vrot.lane.b32.xlu0 %v2599_v42, %s4228_s21  ;;  %v3999_v47 = vpop.eup %3998  ;;  %s1975_s21 = scalar_lea.vmem %s5814_s30, %s4857_s17 [#allocation7] }
 0x59b   : >> { %v1976_v42 = vld [vmem:[%s1975_s21] sm:$0xff] }
 0x59d   : >> { %2747 = vrot.lane.b32.xlu1 %v3993_v25, %s4229_s3  ;;  %v3355_v25 = vld [vmem:[%s5758_s12] ss:$0 sm:$0xff] }
 0x59e   : >> { %2745 = vrot.lane.b32.xlu0 %v3995_v41, %s4229_s3  ;;  %v4001_v59 = vpop.eup %4000  ;;  %v1984_v41 = vmul.f32 %v3355_v25, %v1976_v42 }
 0x59f   : >> { %v4003_v33 = vpop.eup %4002 }
 0x5a1   : >> { %2751 = vrot.lane.b32.xlu1 %v3997_v6, %s4229_s3  ;;  %v1986_v6 = vsel %vm1985_vm6, %v1984_v41, 0.0  ;;  %v2698_v41 = vsub.f32 1.0, %v5406_v31 }
 0x5a2   : >> { %2749 = vrot.lane.b32.xlu0 %v3999_v47, %s4229_s3 }
 0x5a5   : >> { %2755 = vrot.lane.b32.xlu1 %v4001_v59, %s4229_s3 }
 0x5a6   : >> { %2753 = vrot.lane.b32.xlu0 %v4003_v33, %s4229_s3 }
 0x5fa   : >> { %v2620_v1 = vpop.permute.xlu1 %2619 }
 0x5fc   : >> { %v2618_v55 = vpop.permute.xlu0 %2617 }
 0x5fe   : >> { %v2624_v20 = vpop.permute.xlu1 %2623 }
 0x600   : >> { %v2622_v62 = vpop.permute.xlu0 %2621 }
 0x603   : >> { %v2628_v26 = vpop.permute.xlu1 %2627 }
 0x604   : >> { %v2626_v52 = vpop.permute.xlu0 %2625 }
 0x607   : >> { %v2632_v9 = vpop.permute.xlu1 %2631 }
 0x608   : >> { %v2630_v28 = vpop.permute.xlu0 %2629 }
 0x609   : >> { %v2671_v58 = vadd.f32 %v2630_v28, %v5402_v27 }
 0x60b   : >> { %v2648_v24 = vpop.permute.xlu1 %2647 }
 0x60c   : >> { %v2680_v57 = vadd.f32 %v2648_v24, %v5366_v4  ;;  %v2646_v49 = vpop.permute.xlu0 %2645  ;;  %v2666_v4 = vadd.f32 %v2620_v1, %v5346_v54  ;;  %v2667_v54 = vadd.f32 %v2622_v62, %v5371_v34 }
 0x60d   : >> { %v2679_v29 = vadd.f32 %v2646_v49, %v5374_v61  ;;  %v5804_v61 = vld [vmem:[#allocation22_spill] sm:$0xff] }
 0x60e   : >> { %4004 = vtanh.f32 %v2680_v57 }
 0x60f   : >> { %4006 = vtanh.f32 %v2679_v29  ;;  %v2748_v47 = vpop.permute.xlu1 %2747 }
 0x610   : >> { %4008 = vtanh.f32 %v2666_v4  ;;  %v2746_v59 = vpop.permute.xlu0 %2745 }
 0x613   : >> { %v2752_v33 = vpop.permute.xlu1 %2751 }
 0x614   : >> { %v2750_v1 = vpop.permute.xlu0 %2749 }
 0x61b   : >> { %v4005_v17 = vpop.eup %4004 }
 0x61c   : >> { %v4007_v43 = vpop.eup %4006  ;;  %2759 = vrot.lane.b32.xlu1 %v4005_v17, %s4229_s3 }
 0x61d   : >> { %2757 = vrot.lane.b32.xlu0 %v4007_v43, %s4229_s3  ;;  %v4009_v34 = vpop.eup %4008  ;;  %v2705_v43 = vsub.f32 1.0, %v5304_v8 }
 0x620   : >> { %2811 = vrot.lane.b32.xlu1 %v4216_v36, %s4230_s4  ;;  %v5805_v36 = vld [vmem:[#allocation23_spill] sm:$0xff] }
 0x621   : >> { %2809 = vrot.lane.b32.xlu0 %v4220_v35, %s4230_s4  ;;  %v2668_v35 = vadd.f32 %v2624_v20, %v5362_v19  ;;  %v2669_v19 = vadd.f32 %v2626_v52, %v5386_v48  ;;  %v2754_v20 = vpop.permute.xlu0 %2753 }
 0x623   : >> { %4010 = vtanh.f32 %v2668_v35 }
 0x624   : >> { %2815 = vrot.lane.b32.xlu1 %v4208_v38, %s4230_s4  ;;  %v2665_v38 = vadd.f32 %v2618_v55, %v5354_v30  ;;  %v2672_v30 = vadd.f32 %v2632_v9, %v5396_v50  ;;  %v2756_v55 = vpop.permute.xlu1 %2755 }
 0x625   : >> { %2813 = vrot.lane.b32.xlu0 %v4212_v37, %s4230_s4  ;;  %v5806_v37 = vld [vmem:[#allocation20_spill] sm:$0xff] }
 0x626   : >> { %4012 = vtanh.f32 %v2665_v38  ;;  %v2706_v38 = vsub.f32 1.0, %v5330_v15 }
 0x628   : >> { %2819 = vrot.lane.b32.xlu1 %v4200_v40, %s4230_s4  ;;  %v5807_v40 = vld [vmem:[#allocation21_spill] sm:$0xff] }
 0x629   : >> { %2817 = vrot.lane.b32.xlu0 %v4204_v39, %s4230_s4  ;;  %v2670_v39 = vadd.f32 %v2628_v26, %v5383_v21  ;;  %v5811_v21 = vld [vmem:[#allocation17_spill] sm:$0xff] }
 0x62b   : >> { %4014 = vtanh.f32 %v2670_v39 }
 0x62c   : >> { %2823 = vrot.lane.b32.xlu1 %v5804_v61, %s4230_s4  ;;  %4016 = vtanh.f32 %v2667_v54 }
 0x62d   : >> { %2821 = vrot.lane.b32.xlu0 %v5805_v36, %s4230_s4  ;;  %4018 = vtanh.f32 %v2672_v30  ;;  %v2785_v36 = vmul.f32 %v2746_v59, %v2705_v43 }
 0x62e   : >> { %4020 = vtanh.f32 %v2669_v19 }
 0x62f   : >> { %4022 = vtanh.f32 %v2671_v58 }
 0x630   : >> { %2827 = vrot.lane.b32.xlu1 %v5806_v37, %s4230_s4  ;;  %v4011_v50 = vpop.eup %4010 }
 0x631   : >> { %2825 = vrot.lane.b32.xlu0 %v5807_v40, %s4230_s4 }
 0x633   : >> { %v4013_v48 = vpop.eup %4012 }
 0x634   : >> { %2831 = vrot.lane.b32.xlu1 %v5808_v7, %s4230_s4  ;;  %v2786_v7 = vmul.f32 %v2748_v47, %v2706_v38 }
 0x635   : >> { %2829 = vrot.lane.b32.xlu0 %v5809_v45, %s4230_s4  ;;  %v2707_v45 = vsub.f32 1.0, %v5314_v60 }
 0x638   : >> { %2835 = vrot.lane.b32.xlu1 %v5810_v51, %s4230_s4  ;;  %v4015_v56 = vpop.eup %4014 }
 0x639   : >> { %2833 = vrot.lane.b32.xlu0 %v5811_v21, %s4230_s4  ;;  %v4017_v14 = vpop.eup %4016  ;;  %v2787_v21 = vmul.f32 %v2750_v1, %v2707_v45 }
 0x63a   : >> { %v4019_v27 = vpop.eup %4018 }
 0x63b   : >> { %v4021_v16 = vpop.eup %4020 }
 0x63c   : >> { %2731 = vrot.lane.b32.xlu1 %v4009_v34, %s4229_s3  ;;  %v4023_v18 = vpop.eup %4022 }
 0x63d   : >> { %2837 = vrot.lane.b32.xlu0 %v5812_v12, %s4230_s4 }
 0x640   : >> { %2735 = vrot.lane.b32.xlu1 %v4011_v50, %s4229_s3 }
 0x641   : >> { %2729 = vrot.lane.b32.xlu0 %v4013_v48, %s4229_s3  ;;  %v2709_v48 = vsub.f32 1.0, %v5324_v11 }
 0x644   : >> { %2739 = vrot.lane.b32.xlu1 %v4015_v56, %s4229_s3 }
 0x645   : >> { %2733 = vrot.lane.b32.xlu0 %v4017_v14, %s4229_s3 }
 0x648   : >> { %2743 = vrot.lane.b32.xlu1 %v4019_v27, %s4229_s3  ;;  %v2789_v27 = vmul.f32 %v2754_v20, %v2709_v48 }
 0x649   : >> { %2737 = vrot.lane.b32.xlu0 %v4021_v16, %s4229_s3 }
 0x64c   : >> { %2839 = vrot.lane.b32.xlu1 %v5813_v44, %s4230_s4 }
 0x64d   : >> { %2741 = vrot.lane.b32.xlu0 %v4023_v18, %s4229_s3  ;;  %v2710_v18 = vsub.f32 1.0, %v5338_v22 }
 0x64f   : >> { %v2790_v25 = vmul.f32 %v2756_v55, %v2710_v18  ;;  %v2711_v55 = vsub.f32 1.0, %v5454_v53 }
 0x66c   : >> { %1987 = vadd.xlane.f32.xlu0 %v1986_v6  ;;  %v2704_v6 = vsub.f32 1.0, %v5438_v0 }
 0x68e   : >> { %v5524_v62 = vpop.permute.xlu1 %2759 }
 0x68f   : >> { %v5526_v26 = vpop.permute.xlu0 %2757 }
 0x690   : >> { %v2791_v38 = vmul.f32 %v5526_v26, %v2711_v55  ;;  %v2699_v26 = vsub.f32 1.0, %v5420_v13 }
 0x692   : >> { %v2812_v52 = vpop.permute.xlu1 %2811 }
 0x693   : >> { %v5528_v9 = vpop.permute.xlu0 %2809  ;;  %v2858_v43 = vmul.f32 %v5406_v31, %v2812_v52  ;;  %v2700_v31 = vsub.f32 1.0, %v5415_v10 }
 0x696   : >> { %v5530_v28 = vpop.permute.xlu1 %2815 }
 0x697   : >> { %v5532_v24 = vpop.permute.xlu0 %2813 }
 0x69a   : >> { %v5534_v57 = vpop.permute.xlu1 %2819 }
 0x69b   : >> { %v5536_v49 = vpop.permute.xlu0 %2817 }
 0x69e   : >> { %v2824_v29 = vpop.permute.xlu1 %2823 }
 0x69f   : >> { %v5538_v17 = vpop.permute.xlu0 %2821 }
 0x6a2   : >> { %v2828_v4 = vpop.permute.xlu1 %2827 }
 0x6a3   : >> { %v2826_v61 = vpop.permute.xlu0 %2825  ;;  %v2866_v37 = vmul.f32 %v5330_v15, %v2828_v4 }
 0x6a4   : >> { %v2865_v35 = vmul.f32 %v5304_v8, %v2826_v61  ;;  %v2708_v8 = vsub.f32 1.0, %v5334_v23 }
 0x6a5   : >> { %v2882_v30 = vadd.f32 %v2866_v37, %v2786_v7 }
 0x6a6   : >> { %v2881_v40 = vadd.f32 %v2865_v35, %v2785_v36  ;;  %v2832_v39 = vpop.permute.xlu1 %2831  ;;  %v2788_v50 = vmul.f32 %v2752_v33, %v2708_v8  ;;  %v2864_v33 = vmul.f32 %v5438_v0, %v2824_v29  ;;  %v2857_v0 = vmul.f32 %v5410_v63, %v5528_v9 }
 0x6a7   : >> { %v2830_v54 = vpop.permute.xlu0 %2829  ;;  %v2868_v34 = vmul.f32 %v5334_v23, %v2832_v39  ;;  %v2702_v9 = vsub.f32 1.0, %v5427_v32 }
 0x6a8   : >> { %2921 = vrot.lane.b32.xlu1 %v2881_v40, %s4229_s3  ;;  %v2867_v19 = vmul.f32 %v5314_v60, %v2830_v54 }
 0x6a9   : >> { %v2884_v56 = vadd.f32 %v2868_v34, %v2788_v50  ;;  %v3356_v50 = vld [vmem:[#allocation4] ss:$0 sm:$0xff] }
 0x6aa   : >> { %v2836_v51 = vpop.permute.xlu1 %2835  ;;  %v2883_v15 = vadd.f32 %v2867_v19, %v2787_v21  ;;  %v2862_v19 = vmul.f32 %v5427_v32, %v5534_v57  ;;  %v2863_v32 = vmul.f32 %v5444_v5, %v5538_v17  ;;  %v2712_v57 = vsub.f32 1.0, %v5451_v46 }
 0x6ab   : >> { %v2834_v12 = vpop.permute.xlu0 %2833  ;;  %v2870_v23 = vmul.f32 %v5338_v22, %v2836_v51  ;;  %v2697_v22 = vsub.f32 1.0, %v5410_v63  ;;  %v2859_v63 = vmul.f32 %v5420_v13, %v5532_v24  ;;  %v2861_v13 = vmul.f32 %v5430_v3, %v5536_v49 }
 0x6ac   : >> { %2923 = vrot.lane.b32.xlu1 %v2882_v30, %s4229_s3  ;;  %v2869_v14 = vmul.f32 %v5324_v11, %v2834_v12  ;;  %v2703_v24 = vsub.f32 1.0, %v5444_v5 }
 0x6ad   : >> { %v2886_v47 = vadd.f32 %v2870_v23, %v2790_v25 }
 0x6ae   : >> { %v2732_v58 = vpop.permute.xlu1 %2731  ;;  %v2885_v44 = vadd.f32 %v2869_v14, %v2789_v27 }
 0x6af   : >> { %v2838_v16 = vpop.permute.xlu0 %2837  ;;  %v2778_v11 = vmul.f32 %v2732_v58, %v2698_v41 }
 0x6b0   : >> { %2925 = vrot.lane.b32.xlu1 %v2883_v15, %s4229_s3  ;;  %v2871_v4 = vmul.f32 %v5454_v53, %v2838_v16  ;;  %v2860_v53 = vmul.f32 %v5415_v10, %v5530_v28  ;;  %v2701_v10 = vsub.f32 1.0, %v5430_v3  ;;  %v2792_v3 = vmul.f32 %v5524_v62, %v2712_v57 }
 0x6b1   : >> { %v2874_v36 = vadd.f32 %v2858_v43, %v2778_v11 }
 0x6b2   : >> { %v2736_v60 = vpop.permute.xlu1 %2735  ;;  %v2887_v52 = vadd.f32 %v2871_v4, %v2791_v38 }
 0x6b3   : >> { %v2730_v1 = vpop.permute.xlu0 %2729  ;;  %v2780_v29 = vmul.f32 %v2736_v60, %v2700_v31 }
 0x6b4   : >> { %2927 = vrot.lane.b32.xlu1 %v2884_v56, %s4229_s3  ;;  %v2777_v35 = vmul.f32 %v2730_v1, %v2697_v22 }
 0x6b5   : >> { %v2876_v39 = vadd.f32 %v2860_v53, %v2780_v29 }
 0x6b6   : >> { %v2740_v42 = vpop.permute.xlu1 %2739  ;;  %v2873_v37 = vadd.f32 %v2857_v0, %v2777_v35 }
 0x6b7   : >> { %v2734_v40 = vpop.permute.xlu0 %2733  ;;  %v2782_v45 = vmul.f32 %v2740_v42, %v2702_v9 }
 0x6b8   : >> { %2929 = vrot.lane.b32.xlu1 %v2885_v44, %s4229_s3  ;;  %v2779_v54 = vmul.f32 %v2734_v40, %v2699_v26 }
 0x6b9   : >> { %v2878_v28 = vadd.f32 %v2862_v19, %v2782_v45 }
 0x6ba   : >> { %v2744_v59 = vpop.permute.xlu1 %2743  ;;  %v2875_v30 = vadd.f32 %v2859_v63, %v2779_v54 }
 0x6bb   : >> { %v2784_v20 = vmul.f32 %v2744_v59, %v2704_v6  ;;  %v2738_v7 = vpop.permute.xlu0 %2737 }
 0x6bc   : >> { %2931 = vrot.lane.b32.xlu1 %v2886_v47, %s4229_s3  ;;  %v2781_v51 = vmul.f32 %v2738_v7, %v2701_v10 }
 0x6bd   : >> { %v2880_v61 = vadd.f32 %v2864_v33, %v2784_v20 }
 0x6be   : >> { %v2877_v8 = vadd.f32 %v2861_v13, %v2781_v51  ;;  %v2840_v15 = vpop.permute.xlu1 %2839 }
 0x6bf   : >> { %2919 = vrot.lane.b32.xlu0 %v2880_v61, %s4229_s3  ;;  %v2742_v21 = vpop.permute.xlu0 %2741  ;;  %v2872_v58 = vmul.f32 %v5451_v46, %v2840_v15 }
 0x6c0   : >> { %2907 = vrot.lane.b32.xlu1 %v2874_v36, %s4229_s3  ;;  %v2783_v34 = vmul.f32 %v2742_v21, %v2703_v24 }
 0x6c1   : >> { %v2888_v49 = vadd.f32 %v2872_v58, %v2792_v3 }
 0x6c2   : >> { %v2879_v12 = vadd.f32 %v2863_v32, %v2783_v34 }
 0x6c3   : >> { %2933 = vrot.lane.b32.xlu0 %v2887_v52, %s4229_s3 }
 0x6c4   : >> { %2905 = vrot.lane.b32.xlu1 %v2873_v37, %s4229_s3 }
 0x6c8   : >> { %2911 = vrot.lane.b32.xlu1 %v2876_v39, %s4229_s3 }
 0x6cc   : >> { %2909 = vrot.lane.b32.xlu1 %v2875_v30, %s4229_s3 }
 0x6d0   : >> { %2915 = vrot.lane.b32.xlu1 %v2878_v28, %s4229_s3 }
 0x6d4   : >> { %2913 = vrot.lane.b32.xlu1 %v2877_v8, %s4229_s3 }
 0x6d8   : >> { %2917 = vrot.lane.b32.xlu1 %v2879_v12, %s4229_s3 }
 0x6dc   : >> { %2935 = vrot.lane.b32.xlu1 %v2888_v49, %s4229_s3 }
 0x6f5   : >> { %v1988_v48 = vpop.xlane.xlu0 %1987 }
 0x6f6   : >> { %v1989_v5 = vadd.f32 %v1988_v48, %v5342_v2 }
 0x6f8   : >> { %v1997_v17 = vadd.f32 %v3356_v50, %v1989_v5 }
 0x6fa   : >> { %v3357_v56 = vmul.f32 -1.442695, %v1997_v17 }
 0x6fc   : >> { %4024 = vpow2.f32 %v3357_v56 }
 0x709   : >> { %v4025_v14 = vpop.eup %4024 }
 0x70a   : >> { %v2001_v60 = vadd.f32 1.0, %v4025_v14 }
 0x70c   : >> { %4026 = vrcp.f32 %v2001_v60 }
 0x719   : >> { %v4027_v46 = vpop.eup %4026 }
 0x71a   : >> { %2006 = vst.msk [vmem:[%s2004_s29] sm:$0xff] %vm2005_vm7, %v4027_v46  ;;  %v2922_v62 = vpop.permute.xlu1 %2921  }
 0x71b   : >> { %v5823_v44 = vmov %v2922_v62  ;;  %2962 = vst.msk [vmem:[%s4746_s0 + $0x40] sm:$0xff] (%p5600_p0), %vm1855_vm4, %v2922_v62 }
 0x71e   : >> { %v2924_v27 = vpop.permute.xlu1 %2923  }
 0x71f   : >> { %v5822_v45 = vmov %v2924_v27  ;;  %2963 = vst.msk [vmem:[%s4746_s0 + $0x48] sm:$0xff] (%p5600_p0), %vm1855_vm4, %v2924_v27 }
 0x722   : >> { %v2926_v16 = vpop.permute.xlu1 %2925  }
 0x723   : >> { %v5821_v47 = vmov %v2926_v16  ;;  %2964 = vst.msk [vmem:[%s4746_s0 + $0x50] sm:$0xff] (%p5600_p0), %vm1855_vm4, %v2926_v16 }
 0x726   : >> { %v2928_v18 = vpop.permute.xlu1 %2927  }
 0x727   : >> { %v5820_v48 = vmov %v2928_v18  ;;  %2965 = vst.msk [vmem:[%s4746_s0 + $0x58] sm:$0xff] (%p5600_p0), %vm1855_vm4, %v2928_v18 }
 0x72a   : >> { %v2930_v23 = vpop.permute.xlu1 %2929  }
 0x72b   : >> { %v5819_v49 = vmov %v2930_v23  ;;  %2966 = vst.msk [vmem:[%s4746_s0 + $0x60] sm:$0xff] (%p5600_p0), %vm1855_vm4, %v2930_v23 }
 0x72e   : >> { %v2932_v25 = vpop.permute.xlu1 %2931  }
 0x72f   : >> { %v5818_v51 = vmov %v2932_v25  ;;  %2967 = vst.msk [vmem:[%s4746_s0 + $0x68] sm:$0xff] (%p5600_p0), %vm1855_vm4, %v2932_v25 }
 0x731   : >> { %v2920_v41 = vpop.permute.xlu0 %2919  }
 0x732   : >> { %v2908_v6 = vpop.permute.xlu1 %2907   ;;  %v5824_v43 = vmov %v2920_v41  ;;  %2961 = vst.msk [vmem:[%s4746_s0 + $0x38] sm:$0xff] (%p5600_p0), %vm1855_vm4, %v2920_v41 }
 0x733   : >> { %v5830_v36 = vmov %v2908_v6  ;;  %2955 = vst.msk [vmem:[%s4746_s0 + $0x8] sm:$0xff] (%p5600_p0), %vm1855_vm4, %v2908_v6 }
 0x735   : >> { %v2934_v11 = vpop.permute.xlu0 %2933  }
 0x736   : >> { %v2906_v2 = vpop.permute.xlu1 %2905   ;;  %v5817_v52 = vmov %v2934_v11  ;;  %2968 = vst.msk [vmem:[%s4746_s0 + $0x70] sm:$0xff] (%p5600_p0), %vm1855_vm4, %v2934_v11 }
 0x737   : >> { %v5831_v35 = vmov %v2906_v2  ;;  %2954 = vst.msk [vmem:[%s4746_s0] sm:$0xff] (%p5600_p0), %vm1855_vm4, %v2906_v2 }
 0x73a   : >> { %v2912_v59 = vpop.permute.xlu1 %2911  }
 0x73b   : >> { %v5828_v38 = vmov %v2912_v59  ;;  %2957 = vst.msk [vmem:[%s4746_s0 + $0x18] sm:$0xff] (%p5600_p0), %vm1855_vm4, %v2912_v59 }
 0x73e   : >> { %v2910_v33 = vpop.permute.xlu1 %2909  }
 0x73f   : >> { %v5829_v37 = vmov %v2910_v33  ;;  %2956 = vst.msk [vmem:[%s4746_s0 + $0x10] sm:$0xff] (%p5600_p0), %vm1855_vm4, %v2910_v33 }
 0x742   : >> { %v2916_v1 = vpop.permute.xlu1 %2915  }
 0x743   : >> { %v5826_v40 = vmov %v2916_v1  ;;  %2959 = vst.msk [vmem:[%s4746_s0 + $0x28] sm:$0xff] (%p5600_p0), %vm1855_vm4, %v2916_v1 }
 0x746   : >> { %v2914_v20 = vpop.permute.xlu1 %2913  }
 0x747   : >> { %v5827_v39 = vmov %v2914_v20  ;;  %2958 = vst.msk [vmem:[%s4746_s0 + $0x20] sm:$0xff] (%p5600_p0), %vm1855_vm4, %v2914_v20 }
 0x74a   : >> { %v2918_v22 = vpop.permute.xlu1 %2917  }
 0x74b   : >> { %v5825_v42 = vmov %v2918_v22  ;;  %1505 = sbr.rel (!%p5600_p0) target bundleno = 632 (0x278), region = 314  ;;  %2960 = vst.msk [vmem:[%s4746_s0 + $0x30] sm:$0xff] (%p5600_p0), %vm1855_vm4, %v2918_v22 }
 0x74e   : >> { %v2936_v55 = vpop.permute.xlu1 %2935  }
 0x74f   : >> { %v5816_v53 = vmov %v2936_v55  ;;  %2969 = vst.msk [vmem:[%s4746_s0 + $0x78] sm:$0xff] (%p5600_p0), %vm1855_vm4, %v2936_v55 }
 0x750   : > { %2981 = sbr.rel (!%p4365_p6) target bundleno = 1882 (0x75a), region = 205  ;;  %s3404_s2 = sshll.u32 (%p4365_p6), %s4343_s14, 3  ;;  %v3042_v44 = vld [vmem:[%s4743_s28] sm:$0xff] (%p4365_p6)  ;;  %v3044_v42 = vld [vmem:[%s4743_s28 + $0x8] sm:$0xff] (%p4365_p6)  ;;  %v3046_v47 = vld [vmem:[%s4743_s28 + $0x10] sm:$0xff] (%p4365_p6) }
 0x751   : > { %s2983_s30 = scalar_lea.vmem (%p4365_p6), %s5761_s15, %s3404_s2  ;;  %v3048_v43 = vld [vmem:[%s4743_s28 + $0x18] sm:$0xff] (%p4365_p6)  ;;  %v3050_v4 = vld [vmem:[%s4743_s28 + $0x20] sm:$0xff] (%p4365_p6)  ;;  %v3052_v61 = vld [vmem:[%s4743_s28 + $0x28] sm:$0xff] (%p4365_p6) }
 0x752   : > { %3043 = vst [vmem:[%s2983_s30] sm:$0xff] (%p4365_p6), %v3042_v44  ;;  %3045 = vst [vmem:[%s2983_s30 + $0x10] sm:$0xff] (%p4365_p6), %v3044_v42  ;;  %v3054_v36 = vld [vmem:[%s4743_s28 + $0x30] sm:$0xff] (%p4365_p6)  ;;  %v3056_v35 = vld [vmem:[%s4743_s28 + $0x38] sm:$0xff] (%p4365_p6) }
 0x753   : > { %3047 = vst [vmem:[%s2983_s30 + $0x20] sm:$0xff] (%p4365_p6), %v3046_v47  ;;  %3049 = vst [vmem:[%s2983_s30 + $0x30] sm:$0xff] (%p4365_p6), %v3048_v43  ;;  %v3058_v38 = vld [vmem:[%s4743_s28 + $0x40] sm:$0xff] (%p4365_p6)  ;;  %v3060_v0 = vld [vmem:[%s4743_s28 + $0x48] sm:$0xff] (%p4365_p6) }
 0x754   : > { %3051 = vst [vmem:[%s2983_s30 + $0x40] sm:$0xff] (%p4365_p6), %v3050_v4  ;;  %3053 = vst [vmem:[%s2983_s30 + $0x50] sm:$0xff] (%p4365_p6), %v3052_v61  ;;  %v3062_v31 = vld [vmem:[%s4743_s28 + $0x50] sm:$0xff] (%p4365_p6)  ;;  %v3064_v52 = vld [vmem:[%s4743_s28 + $0x58] sm:$0xff] (%p4365_p6) }
 0x755   : > { %3055 = vst [vmem:[%s2983_s30 + $0x60] sm:$0xff] %v3054_v36  ;;  %3057 = vst [vmem:[%s2983_s30 + $0x70] sm:$0xff] %v3056_v35  ;;  %v3066_v29 = vld [vmem:[%s4743_s28 + $0x60] sm:$0xff]  ;;  %v3068_v37 = vld [vmem:[%s4743_s28 + $0x68] sm:$0xff] }
 0x756   : > { %3059 = vst [vmem:[%s2983_s30 + $0x80] sm:$0xff] %v3058_v38  ;;  %3061 = vst [vmem:[%s2983_s30 + $0x90] sm:$0xff] %v3060_v0  ;;  %v3070_v40 = vld [vmem:[%s4743_s28 + $0x70] sm:$0xff]  ;;  %v3072_v53 = vld [vmem:[%s4743_s28 + $0x78] sm:$0xff] }
 0x757   : > { %3063 = vst [vmem:[%s2983_s30 + $0xa0] sm:$0xff] %v3062_v31  ;;  %3065 = vst [vmem:[%s2983_s30 + $0xb0] sm:$0xff] %v3064_v52 }
 0x758   : > { %3067 = vst [vmem:[%s2983_s30 + $0xc0] sm:$0xff] %v3066_v29  ;;  %3069 = vst [vmem:[%s2983_s30 + $0xd0] sm:$0xff] %v3068_v37 }
 0x759   : > { %3071 = vst [vmem:[%s2983_s30 + $0xe0] sm:$0xff] %v3070_v40  ;;  %3073 = vst [vmem:[%s2983_s30 + $0xf0] sm:$0xff] %v3072_v53 }
 0x75a PF: > { %s3409_s21 = sshll.u32 %s4343_s14, 11  ;;  %s3086_s27 = sshll.u32 %s4746_s0, 4  ;;  %s5705_s27 = int_to_ptr.vmem [resolvable:$true] %s3086_s27 }
 0x75b   : > { %s5703_s17 = scalar_lea.hbm %s5762_s16, %s3409_s21  ;;  %s4028_s22 = scalar_lea.vmem %s5705_s27, 2048 }
 0x75c   : > { %p4029_p1 = scmp.ne.s32.totalorder %s5705_s27, %s4028_s22  ;;  %s4231_s28 = smov [#allocation9]  }
 0x75d   : > { %s4032_s2 = sshll.u32 %s4231_s28, 4  ;;  %s4033_s2 = int_to_ptr.vmem [resolvable:$false] %s4032_s2 }
 0x75e   : > { %p4030_p2 = pnand %p4029_p1, %p4365_p6  ;;  %s4034_s14 = scalar_lea.vmem %s4033_s2, 4096 }
 0x75f   : > { %p4035_p4 = scmp.lt.s32.totalorder %s5705_s27, %s4033_s2  ;;  %p4036_p5 = scmp.lt.s32.totalorder %s4034_s14, %s4028_s22 }
 0x760   : > { %p4031_p3 = pneg %p4030_p2 }
 0x761   : > { %p4037_p7 = por %p4036_p5, %p4035_p4 }
 0x763   : > { %p4038_p10 = pnand %p4037_p7, %p4031_p3 }
 0x765   : > { %4041 = shalt.err (!%p4038_p10)
}
 0x766   : > { %s4042_s0 = scalar_lea.hbm %s5703_s17, 2048  ;;  %s4046_s30 = scalar_lea.hbm %s5762_s16, 4096 }
 0x767   : > { %p4043_p11 = scmp.ne.s32.totalorder %s5703_s17, %s4042_s0  ;;  %p4047_p0 = scmp.lt.s32.totalorder %s5703_s17, %s5762_s16 }
 0x768   : > { %p4048_p1 = scmp.lt.s32.totalorder %s4046_s30, %s4042_s0 }
 0x769   : > { %p4044_p12 = pnand %p4043_p11, %p4365_p6 }
 0x76a   : > { %p4049_p2 = por %p4048_p1, %p4047_p0 }
 0x76b   : > { %p4045_p13 = pneg %p4044_p12 }
 0x76d   : > { %p4050_p3 = pnand %p4049_p2, %p4045_p13 }
 0x76f   : > { %4053 = shalt.err (!%p4050_p3)
}
 0x770   : > { %s4232_s29 = smov 128   ;;  %s4233_s22 = smov 8  }
 0x771   : > { %3675 = dma.vmem_to_hbm [thread:$0]  (%p4365_p6), %s5705_s27, 2048, %s5703_s17, %s5674_s20, %s4232_s29, %s4232_s29, %s4233_s22  }
 0x772 PF: > { %s3108_s28 = sand.u32 1, %s4144_s23   ;;  %p3678_p4 = pnand %p3293_p9, %p4369_p8 }
 0x773   : > { %s3109_s2 = scalar_lea.sflag [#allocation10], %s3108_s28 }
 0x774   : > { %p3679_p5 = pneg %p3678_p4 }
 0x776   : > { %4139 = dma.done.wait (%p3679_p5), %s3109_s2, 2048  }
 0x777   : > { %4141 = vsyncadd (%p3679_p5), %s3109_s2, 4294965248  ;;  %s5833_s26 = sld [smem:[#allocation12_spill]]  ;;  %s5835_s23 = smov %s4148_s24 }
 0x778   : > { %s5834_s14 = sld [smem:[#allocation13_spill]]  ;;  %s5836_s24 = smov %s4152_s25 }
 0x77d   : > { %p29_p7 = scmp.ge.s32.totalorder %s5833_s26, 4  }
 0x77e   : > { %s5837_s25 = smov %s5834_s14 }
 0x77f   :  { %31 = sbr.rel (!%p29_p7) target bundleno = 9 (0x9), region = 325 }
 0x784   :  { %3114 = vsyncpa [#allocation10], 1 }
 0x785   :  { %3116 = vsyncpa [#allocation10 + $0x1], 1 }

</bundles_post_ra>
